<compile_context>
chip_gen: v5e
topology: v5e:2x2
jax: 0.10.0
libtpu: 0.0.40
codegen_flags: <defaults>
</compile_context>

<pallas_src>
import functools

import jax
import jax.numpy as jnp
from jax import lax
from jax.experimental import pallas as pl
from jax.experimental.pallas import tpu as pltpu


_FLOAT_INF_BITS = 0x7F800000   # bit pattern of +inf; upper bound since ce >= 0


def _pick_batch_tile(B, target=8):
    """Batch block: `target` rows if it divides B, else the whole batch.

    (Second-to-last block dims must be a multiple of 8 or equal to the full
    dim; both choices satisfy that.)"""
    if B >= target and B % target == 0:
        return target
    return B


def _detection_loss_kernel(loc_p_ref, loc_t_ref, pos4_ref, cls_p_ref, cls_t_ref,
                           out_ref, *, num_anchors, num_classes):
    A = num_anchors
    C = num_classes

    # ---- positive mask & per-row counts (anchors lane-dense) ---------------
    t = cls_t_ref[...]                                    # (TB, A) int32
    pos = t > 0
    posf = pos.astype(jnp.float32)
    num_pos_i = jnp.sum(pos.astype(jnp.int32), axis=-1, keepdims=True)   # (TB, 1)
    num_pos_f = num_pos_i.astype(jnp.float32)

    # ---- smooth-L1 (beta=1) over flattened (anchor, coord) lanes -----------
    d = loc_p_ref[...].astype(jnp.float32) - loc_t_ref[...].astype(jnp.float32)
    ad = jnp.abs(d)                                       # (TB, 4A)
    sl1 = jnp.where(ad < 1.0, 0.5 * ad * ad, ad - 0.5)
    loc_sum = jnp.sum(sl1 * pos4_ref[...], axis=-1, keepdims=True)       # (TB, 1)

    # ---- per-anchor cross entropy, ignore_index = -1 ------------------------
    # Classes unrolled (C is small & static); each slice is a (TB, A) row.
    x0 = cls_p_ref[0].astype(jnp.float32)                 # (TB, A)
    m = x0
    for c in range(1, C):
        m = jnp.maximum(m, cls_p_ref[c].astype(jnp.float32))
    s = jnp.exp(x0 - m)
    sel = jnp.where(t == 0, x0, 0.0)
    for c in range(1, C):
        xc = cls_p_ref[c].astype(jnp.float32)
        s = s + jnp.exp(xc - m)
        sel = sel + jnp.where(t == c, xc, 0.0)
    lse = m + jnp.log(s)                                  # (TB, A)
    ce = jnp.maximum(lse - sel, 0.0)                      # enforce ce >= 0 invariant
    ce = jnp.where(t == -1, 0.0, ce)                      # ignored anchors -> 0
    pos_ce = jnp.sum(ce * posf, axis=-1, keepdims=True)   # (TB, 1)

    # ---- OHEM: exact summed top-num_neg via bit-pattern bisection ----------
    # (v >= 0, so the f32 bit pattern is order-preserving as int32.)
    v = jnp.where(pos, 0.0, ce)                           # (TB, A)
    v_bits = pltpu.bitcast(v, jnp.int32)
    num_neg_i = jnp.clip(3 * num_pos_i, 1, A - 1)         # (TB, 1) int32
    num_neg_f = num_neg_i.astype(jnp.float32)

    def bs_body(_, carry):
        lo, hi = carry
        mid = lo + jnp.right_shift(hi - lo, 1)
        cnt = jnp.sum((v_bits >= mid).astype(jnp.int32), axis=-1, keepdims=True)
        take = cnt >= num_neg_i
        return jnp.where(take, mid, lo), jnp.where(take, hi, mid)

    lo0 = jnp.zeros_like(num_neg_i)
    hi0 = jnp.full_like(num_neg_i, _FLOAT_INF_BITS)
    kth_bits, _ = lax.fori_loop(0, 32, bs_body, (lo0, hi0), unroll=True)

    # Fused post-search pass: one compare, three lane reductions.
    gt = v_bits > kth_bits                                # (TB, A)
    kth_val = jnp.max(jnp.where(gt, 0.0, v), axis=-1, keepdims=True)     # (TB, 1)
    cnt_gt = jnp.sum(gt.astype(jnp.int32), axis=-1, keepdims=True).astype(jnp.float32)
    sum_gt = jnp.sum(jnp.where(gt, v, 0.0), axis=-1, keepdims=True)
    neg_sum = sum_gt + (num_neg_f - cnt_gt) * kth_val     # exact top-k sum (ties ok)

    # ---- single packed writeback: [num_pos, loc_sum, pos_ce, neg_sum] ------
    out_ref[...] = jnp.concatenate([num_pos_f, loc_sum, pos_ce, neg_sum], axis=-1)


@jax.jit
def detection_loss(loc_preds, loc_targets, cls_preds, cls_targets):
    """Returns (20 * loc_loss, cls_loss) exactly like the PyTorch module."""
    B, A, _ = loc_preds.shape
    C = cls_preds.shape[-1]
    TB = _pick_batch_tile(B)

    # Free (contiguous) reshapes: anchors*coords on the lane axis, no HBM transpose.
    loc_p_flat = loc_preds.reshape(B, A * 4)
    loc_t_flat = loc_targets.reshape(B, A * 4)

    cls_t = cls_targets.astype(jnp.int32)                               # [B, A]
    # Positive mask repeated over the 4 box coords; tiny tensor replacing the
    # two full [B, A, 4] -> [B, 4, A] transposes of the previous version.
    pos4 = jnp.repeat((cls_t > 0).astype(jnp.float32), 4, axis=1)       # [B, 4A]

    # Class-major layout so each class row is anchor-lane-dense in VMEM.
    cls_p_cba = jnp.transpose(cls_preds, (2, 0, 1))                     # [C, B, A]

    kernel = functools.partial(_detection_loss_kernel,
                               num_anchors=A, num_classes=C)

    stats = pl.pallas_call(
        kernel,
        out_shape=jax.ShapeDtypeStruct((B, 4), jnp.float32),
        grid=(B // TB,),
        in_specs=[
            pl.BlockSpec((TB, 4 * A), lambda b: (b, 0)),     # loc_preds (flat)
            pl.BlockSpec((TB, 4 * A), lambda b: (b, 0)),     # loc_targets (flat)
            pl.BlockSpec((TB, 4 * A), lambda b: (b, 0)),     # repeated pos mask
            pl.BlockSpec((C, TB, A), lambda b: (0, b, 0)),   # cls_preds (class-major)
            pl.BlockSpec((TB, A), lambda b: (b, 0)),         # cls_targets
        ],
        out_specs=pl.BlockSpec((TB, 4), lambda b: (b, 0)),
        compiler_params=pltpu.CompilerParams(
            dimension_semantics=("parallel",),
            vmem_limit_bytes=64 * 1024 * 1024,
        ),
    )(loc_p_flat, loc_t_flat, pos4, cls_p_cba, cls_t)

    # num_pos_total == 0 over the whole batch yields NaN, same as the torch ref.
    num_pos_total = jnp.sum(stats[:, 0])
    loc_loss = jnp.sum(stats[:, 1]) / num_pos_total
    cls_loss = (jnp.sum(stats[:, 2]) + jnp.sum(stats[:, 3])) / num_pos_total
    return 20.0 * loc_loss, cls_loss


def detection_loss_ref(loc_preds, loc_targets, cls_preds, cls_targets):
    """Pure-JAX reference mirroring the PyTorch forward."""
    B, A, _ = loc_preds.shape
    pos = cls_targets > 0
    num_pos = jnp.sum(pos.astype(jnp.int32), axis=1, keepdims=True)
    npf = jnp.sum(num_pos).astype(jnp.float32)

    d = loc_preds - loc_targets
    ad = jnp.abs(d)
    sl1 = jnp.where(ad < 1.0, 0.5 * ad * ad, ad - 0.5)
    loc_loss = jnp.sum(jnp.where(pos[:, :, None], sl1, 0.0)) / npf

    lse = jax.scipy.special.logsumexp(cls_preds, axis=-1)
    sel = jnp.take_along_axis(cls_preds,
                              jnp.maximum(cls_targets, 0)[..., None], axis=-1)[..., 0]
    ce = jnp.where(cls_targets == -1, 0.0, lse - sel)
    pos_sum = jnp.sum(jnp.where(pos, ce, 0.0))
    v = jnp.where(pos, 0.0, ce)
    num_neg = jnp.clip(3 * num_pos, 1, A - 1)
    v_desc = -jnp.sort(-v, axis=1)
    idx = jnp.arange(A)[None, :]
    neg_sum = jnp.sum(jnp.where(idx < num_neg, v_desc, 0.0))
    cls_loss = (pos_sum + neg_sum) / npf
    return 20.0 * loc_loss, cls_loss


if __name__ == "__main__":
    key = jax.random.PRNGKey(0)
    k1, k2, k3, k4 = jax.random.split(key, 4)
    B, A, C = 16, 256, 2   # batch, anchors, num_classes (module default C=2)
    loc_preds = jax.random.normal(k1, (B, A, 4), jnp.float32)
    loc_targets = jax.random.normal(k2, (B, A, 4), jnp.float32)
    cls_preds = jax.random.normal(k3, (B, A, C), jnp.float32)
    cls_targets = jax.random.randint(k4, (B, A), -1, C, dtype=jnp.int32)
    cls_targets = cls_targets.at[:, 0].set(1)   # guarantee at least one positive

    loc_loss, cls_loss = jax.block_until_ready(
        detection_loss(loc_preds, loc_targets, cls_preds, cls_targets))
    ref_loc, ref_cls = detection_loss_ref(loc_preds, loc_targets,
                                          cls_preds, cls_targets)

    assert jnp.allclose(loc_loss, ref_loc, rtol=1e-3, atol=1e-3), (loc_loss, ref_loc)
    assert jnp.allclose(cls_loss, ref_cls, rtol=1e-3, atol=1e-3), (cls_loss, ref_cls)
    print("KERNEL_OK")
</pallas_src>

<mosaic_0001>
module attributes {stable_mosaic.version = 11 : i64} {
  func.func @_detection_loss_kernel(%arg0: i32, %arg1: memref<8x1024xf32, #tpu.memory_space<vmem>>, %arg2: memref<8x1024xf32, #tpu.memory_space<vmem>>, %arg3: memref<8x1024xf32, #tpu.memory_space<vmem>>, %arg4: memref<2x8x256xf32, #tpu.memory_space<vmem>>, %arg5: memref<8x256xi32, #tpu.memory_space<vmem>>, %arg6: memref<8x4xf32, #tpu.memory_space<vmem>>) attributes {dimension_semantics = [#tpu.dimension_semantics<parallel>], iteration_bounds = array<i64: 2>, scalar_prefetch = 0 : i64, scratch_operands = 0 : i64, tpu.core_type = #tpu.core_type<tc>, window_params = [{transform_indices = @transform_0, window_bounds = array<i64: 8, 1024>}, {transform_indices = @transform_1, window_bounds = array<i64: 8, 1024>}, {transform_indices = @transform_2, window_bounds = array<i64: 8, 1024>}, {transform_indices = @transform_3, window_bounds = array<i64: 2, 8, 256>}, {transform_indices = @transform_4, window_bounds = array<i64: 8, 256>}, {transform_indices = @transform_5, window_bounds = array<i64: 8, 4>}]} {
    %c0 = arith.constant 0 : index
    %c0_0 = arith.constant 0 : index
    %0 = vector.load %arg5[%c0, %c0_0] : memref<8x256xi32, #tpu.memory_space<vmem>>, vector<8x256xi32>
    %c0_i32 = arith.constant 0 : i32
    %1 = vector.broadcast %c0_i32 : i32 to vector<8x256xi32>
    %2 = arith.cmpi sgt, %0, %1 : vector<8x256xi32>
    %3 = arith.extui %2 : vector<8x256xi1> to vector<8x256xi32>
    %4 = arith.sitofp %3 : vector<8x256xi32> to vector<8x256xf32>
    %5 = arith.extui %2 : vector<8x256xi1> to vector<8x256xi32>
    %cst = arith.constant dense<0> : vector<8xi32>
    %6 = vector.multi_reduction <add>, %5, %cst [1] : vector<8x256xi32> to vector<8xi32>
    %7 = vector.shape_cast %6 : vector<8xi32> to vector<8x1xi32>
    %8 = arith.sitofp %7 : vector<8x1xi32> to vector<8x1xf32>
    %c0_1 = arith.constant 0 : index
    %c0_2 = arith.constant 0 : index
    %9 = vector.load %arg1[%c0_1, %c0_2] : memref<8x1024xf32, #tpu.memory_space<vmem>>, vector<8x1024xf32>
    %c0_3 = arith.constant 0 : index
    %c0_4 = arith.constant 0 : index
    %10 = vector.load %arg2[%c0_3, %c0_4] : memref<8x1024xf32, #tpu.memory_space<vmem>>, vector<8x1024xf32>
    %11 = arith.subf %9, %10 : vector<8x1024xf32>
    %12 = math.absf %11 : vector<8x1024xf32>
    %cst_5 = arith.constant 1.000000e+00 : f32
    %13 = vector.broadcast %cst_5 : f32 to vector<8x1024xf32>
    %14 = arith.cmpf olt, %12, %13 : vector<8x1024xf32>
    %cst_6 = arith.constant 5.000000e-01 : f32
    %15 = vector.broadcast %cst_6 : f32 to vector<8x1024xf32>
    %16 = arith.mulf %15, %12 : vector<8x1024xf32>
    %17 = arith.mulf %16, %12 : vector<8x1024xf32>
    %cst_7 = arith.constant 5.000000e-01 : f32
    %18 = vector.broadcast %cst_7 : f32 to vector<8x1024xf32>
    %19 = arith.subf %12, %18 : vector<8x1024xf32>
    %20 = arith.select %14, %17, %19 : vector<8x1024xi1>, vector<8x1024xf32>
    %c0_8 = arith.constant 0 : index
    %c0_9 = arith.constant 0 : index
    %21 = vector.load %arg3[%c0_8, %c0_9] : memref<8x1024xf32, #tpu.memory_space<vmem>>, vector<8x1024xf32>
    %22 = arith.mulf %20, %21 : vector<8x1024xf32>
    %cst_10 = arith.constant dense<0.000000e+00> : vector<8xf32>
    %23 = vector.multi_reduction <add>, %22, %cst_10 [1] : vector<8x1024xf32> to vector<8xf32>
    %24 = vector.shape_cast %23 : vector<8xf32> to vector<8x1xf32>
    %c0_11 = arith.constant 0 : index
    %c0_12 = arith.constant 0 : index
    %c0_13 = arith.constant 0 : index
    %25 = vector.load %arg4[%c0_11, %c0_12, %c0_13] : memref<2x8x256xf32, #tpu.memory_space<vmem>>, vector<1x8x256xf32>
    %26 = vector.shape_cast %25 : vector<1x8x256xf32> to vector<8x256xf32>
    %c1 = arith.constant 1 : index
    %c0_14 = arith.constant 0 : index
    %c0_15 = arith.constant 0 : index
    %27 = vector.load %arg4[%c1, %c0_14, %c0_15] : memref<2x8x256xf32, #tpu.memory_space<vmem>>, vector<1x8x256xf32>
    %28 = vector.shape_cast %27 : vector<1x8x256xf32> to vector<8x256xf32>
    %29 = arith.maximumf %26, %28 : vector<8x256xf32>
    %30 = arith.subf %26, %29 : vector<8x256xf32>
    %31 = math.exp %30 : vector<8x256xf32>
    %c0_i32_16 = arith.constant 0 : i32
    %32 = vector.broadcast %c0_i32_16 : i32 to vector<8x256xi32>
    %33 = arith.cmpi eq, %0, %32 : vector<8x256xi32>
    %cst_17 = arith.constant 0.000000e+00 : f32
    %34 = vector.broadcast %cst_17 : f32 to vector<8x256xf32>
    %35 = arith.select %33, %26, %34 : vector<8x256xi1>, vector<8x256xf32>
    %c1_18 = arith.constant 1 : index
    %c0_19 = arith.constant 0 : index
    %c0_20 = arith.constant 0 : index
    %36 = vector.load %arg4[%c1_18, %c0_19, %c0_20] : memref<2x8x256xf32, #tpu.memory_space<vmem>>, vector<1x8x256xf32>
    %37 = vector.shape_cast %36 : vector<1x8x256xf32> to vector<8x256xf32>
    %38 = arith.subf %37, %29 : vector<8x256xf32>
    %39 = math.exp %38 : vector<8x256xf32>
    %40 = arith.addf %31, %39 : vector<8x256xf32>
    %c1_i32 = arith.constant 1 : i32
    %41 = vector.broadcast %c1_i32 : i32 to vector<8x256xi32>
    %42 = arith.cmpi eq, %0, %41 : vector<8x256xi32>
    %cst_21 = arith.constant 0.000000e+00 : f32
    %43 = vector.broadcast %cst_21 : f32 to vector<8x256xf32>
    %44 = arith.select %42, %37, %43 : vector<8x256xi1>, vector<8x256xf32>
    %45 = arith.addf %35, %44 : vector<8x256xf32>
    %46 = math.log %40 : vector<8x256xf32>
    %47 = arith.addf %29, %46 : vector<8x256xf32>
    %48 = arith.subf %47, %45 : vector<8x256xf32>
    %cst_22 = arith.constant 0.000000e+00 : f32
    %49 = vector.broadcast %cst_22 : f32 to vector<8x256xf32>
    %50 = arith.maximumf %48, %49 : vector<8x256xf32>
    %c-1_i32 = arith.constant -1 : i32
    %51 = vector.broadcast %c-1_i32 : i32 to vector<8x256xi32>
    %52 = arith.cmpi eq, %0, %51 : vector<8x256xi32>
    %cst_23 = arith.constant 0.000000e+00 : f32
    %53 = vector.broadcast %cst_23 : f32 to vector<8x256xf32>
    %54 = arith.select %52, %53, %50 : vector<8x256xi1>, vector<8x256xf32>
    %55 = arith.mulf %54, %4 : vector<8x256xf32>
    %cst_24 = arith.constant dense<0.000000e+00> : vector<8xf32>
    %56 = vector.multi_reduction <add>, %55, %cst_24 [1] : vector<8x256xf32> to vector<8xf32>
    %57 = vector.shape_cast %56 : vector<8xf32> to vector<8x1xf32>
    %cst_25 = arith.constant 0.000000e+00 : f32
    %58 = vector.broadcast %cst_25 : f32 to vector<8x256xf32>
    %59 = arith.select %2, %58, %54 : vector<8x256xi1>, vector<8x256xf32>
    %60 = tpu.bitcast %59 : vector<8x256xf32> -> vector<8x256xi32>
    %c3_i32 = arith.constant 3 : i32
    %61 = vector.broadcast %c3_i32 : i32 to vector<8x1xi32>
    %62 = arith.muli %61, %7 : vector<8x1xi32>
    %c1_i32_26 = arith.constant 1 : i32
    %c255_i32 = arith.constant 255 : i32
    %63 = vector.broadcast %c1_i32_26 : i32 to vector<8x1xi32>
    %64 = arith.maxsi %63, %62 : vector<8x1xi32>
    %65 = vector.broadcast %c255_i32 : i32 to vector<8x1xi32>
    %66 = arith.minsi %65, %64 : vector<8x1xi32>
    %67 = arith.sitofp %66 : vector<8x1xi32> to vector<8x1xf32>
    %c0_i32_27 = arith.constant 0 : i32
    %68 = vector.broadcast %c0_i32_27 : i32 to vector<8x1xi32>
    %c2139095040_i32 = arith.constant 2139095040 : i32
    %69 = vector.broadcast %c2139095040_i32 : i32 to vector<8x1xi32>
    %c0_i32_28 = arith.constant 0 : i32
    %70 = arith.subi %69, %68 : vector<8x1xi32>
    %c1_i32_29 = arith.constant 1 : i32
    %71 = vector.broadcast %c1_i32_29 : i32 to vector<8x1xi32>
    %72 = arith.shrsi %70, %71 : vector<8x1xi32>
    %73 = arith.addi %68, %72 : vector<8x1xi32>
    %74 = vector.broadcast %73 : vector<8x1xi32> to vector<8x256xi32>
    %75 = arith.cmpi sge, %60, %74 : vector<8x256xi32>
    %76 = arith.extui %75 : vector<8x256xi1> to vector<8x256xi32>
    %cst_30 = arith.constant dense<0> : vector<8xi32>
    %77 = vector.multi_reduction <add>, %76, %cst_30 [1] : vector<8x256xi32> to vector<8xi32>
    %78 = vector.shape_cast %77 : vector<8xi32> to vector<8x1xi32>
    %79 = arith.cmpi sge, %78, %66 : vector<8x1xi32>
    %80 = arith.select %79, %73, %68 : vector<8x1xi1>, vector<8x1xi32>
    %81 = arith.select %79, %69, %73 : vector<8x1xi1>, vector<8x1xi32>
    %c1_i32_31 = arith.constant 1 : i32
    %82 = arith.subi %81, %80 : vector<8x1xi32>
    %c1_i32_32 = arith.constant 1 : i32
    %83 = vector.broadcast %c1_i32_32 : i32 to vector<8x1xi32>
    %84 = arith.shrsi %82, %83 : vector<8x1xi32>
    %85 = arith.addi %80, %84 : vector<8x1xi32>
    %86 = vector.broadcast %85 : vector<8x1xi32> to vector<8x256xi32>
    %87 = arith.cmpi sge, %60, %86 : vector<8x256xi32>
    %88 = arith.extui %87 : vector<8x256xi1> to vector<8x256xi32>
    %cst_33 = arith.constant dense<0> : vector<8xi32>
    %89 = vector.multi_reduction <add>, %88, %cst_33 [1] : vector<8x256xi32> to vector<8xi32>
    %90 = vector.shape_cast %89 : vector<8xi32> to vector<8x1xi32>
    %91 = arith.cmpi sge, %90, %66 : vector<8x1xi32>
    %92 = arith.select %91, %85, %80 : vector<8x1xi1>, vector<8x1xi32>
    %93 = arith.select %91, %81, %85 : vector<8x1xi1>, vector<8x1xi32>
    %c2_i32 = arith.constant 2 : i32
    %94 = arith.subi %93, %92 : vector<8x1xi32>
    %c1_i32_34 = arith.constant 1 : i32
    %95 = vector.broadcast %c1_i32_34 : i32 to vector<8x1xi32>
    %96 = arith.shrsi %94, %95 : vector<8x1xi32>
    %97 = arith.addi %92, %96 : vector<8x1xi32>
    %98 = vector.broadcast %97 : vector<8x1xi32> to vector<8x256xi32>
    %99 = arith.cmpi sge, %60, %98 : vector<8x256xi32>
    %100 = arith.extui %99 : vector<8x256xi1> to vector<8x256xi32>
    %cst_35 = arith.constant dense<0> : vector<8xi32>
    %101 = vector.multi_reduction <add>, %100, %cst_35 [1] : vector<8x256xi32> to vector<8xi32>
    %102 = vector.shape_cast %101 : vector<8xi32> to vector<8x1xi32>
    %103 = arith.cmpi sge, %102, %66 : vector<8x1xi32>
    %104 = arith.select %103, %97, %92 : vector<8x1xi1>, vector<8x1xi32>
    %105 = arith.select %103, %93, %97 : vector<8x1xi1>, vector<8x1xi32>
    %c3_i32_36 = arith.constant 3 : i32
    %106 = arith.subi %105, %104 : vector<8x1xi32>
    %c1_i32_37 = arith.constant 1 : i32
    %107 = vector.broadcast %c1_i32_37 : i32 to vector<8x1xi32>
    %108 = arith.shrsi %106, %107 : vector<8x1xi32>
    %109 = arith.addi %104, %108 : vector<8x1xi32>
    %110 = vector.broadcast %109 : vector<8x1xi32> to vector<8x256xi32>
    %111 = arith.cmpi sge, %60, %110 : vector<8x256xi32>
    %112 = arith.extui %111 : vector<8x256xi1> to vector<8x256xi32>
    %cst_38 = arith.constant dense<0> : vector<8xi32>
    %113 = vector.multi_reduction <add>, %112, %cst_38 [1] : vector<8x256xi32> to vector<8xi32>
    %114 = vector.shape_cast %113 : vector<8xi32> to vector<8x1xi32>
    %115 = arith.cmpi sge, %114, %66 : vector<8x1xi32>
    %116 = arith.select %115, %109, %104 : vector<8x1xi1>, vector<8x1xi32>
    %117 = arith.select %115, %105, %109 : vector<8x1xi1>, vector<8x1xi32>
    %c4_i32 = arith.constant 4 : i32
    %118 = arith.subi %117, %116 : vector<8x1xi32>
    %c1_i32_39 = arith.constant 1 : i32
    %119 = vector.broadcast %c1_i32_39 : i32 to vector<8x1xi32>
    %120 = arith.shrsi %118, %119 : vector<8x1xi32>
    %121 = arith.addi %116, %120 : vector<8x1xi32>
    %122 = vector.broadcast %121 : vector<8x1xi32> to vector<8x256xi32>
    %123 = arith.cmpi sge, %60, %122 : vector<8x256xi32>
    %124 = arith.extui %123 : vector<8x256xi1> to vector<8x256xi32>
    %cst_40 = arith.constant dense<0> : vector<8xi32>
    %125 = vector.multi_reduction <add>, %124, %cst_40 [1] : vector<8x256xi32> to vector<8xi32>
    %126 = vector.shape_cast %125 : vector<8xi32> to vector<8x1xi32>
    %127 = arith.cmpi sge, %126, %66 : vector<8x1xi32>
    %128 = arith.select %127, %121, %116 : vector<8x1xi1>, vector<8x1xi32>
    %129 = arith.select %127, %117, %121 : vector<8x1xi1>, vector<8x1xi32>
    %c5_i32 = arith.constant 5 : i32
    %130 = arith.subi %129, %128 : vector<8x1xi32>
    %c1_i32_41 = arith.constant 1 : i32
    %131 = vector.broadcast %c1_i32_41 : i32 to vector<8x1xi32>
    %132 = arith.shrsi %130, %131 : vector<8x1xi32>
    %133 = arith.addi %128, %132 : vector<8x1xi32>
    %134 = vector.broadcast %133 : vector<8x1xi32> to vector<8x256xi32>
    %135 = arith.cmpi sge, %60, %134 : vector<8x256xi32>
    %136 = arith.extui %135 : vector<8x256xi1> to vector<8x256xi32>
    %cst_42 = arith.constant dense<0> : vector<8xi32>
    %137 = vector.multi_reduction <add>, %136, %cst_42 [1] : vector<8x256xi32> to vector<8xi32>
    %138 = vector.shape_cast %137 : vector<8xi32> to vector<8x1xi32>
    %139 = arith.cmpi sge, %138, %66 : vector<8x1xi32>
    %140 = arith.select %139, %133, %128 : vector<8x1xi1>, vector<8x1xi32>
    %141 = arith.select %139, %129, %133 : vector<8x1xi1>, vector<8x1xi32>
    %c6_i32 = arith.constant 6 : i32
    %142 = arith.subi %141, %140 : vector<8x1xi32>
    %c1_i32_43 = arith.constant 1 : i32
    %143 = vector.broadcast %c1_i32_43 : i32 to vector<8x1xi32>
    %144 = arith.shrsi %142, %143 : vector<8x1xi32>
    %145 = arith.addi %140, %144 : vector<8x1xi32>
    %146 = vector.broadcast %145 : vector<8x1xi32> to vector<8x256xi32>
    %147 = arith.cmpi sge, %60, %146 : vector<8x256xi32>
    %148 = arith.extui %147 : vector<8x256xi1> to vector<8x256xi32>
    %cst_44 = arith.constant dense<0> : vector<8xi32>
    %149 = vector.multi_reduction <add>, %148, %cst_44 [1] : vector<8x256xi32> to vector<8xi32>
    %150 = vector.shape_cast %149 : vector<8xi32> to vector<8x1xi32>
    %151 = arith.cmpi sge, %150, %66 : vector<8x1xi32>
    %152 = arith.select %151, %145, %140 : vector<8x1xi1>, vector<8x1xi32>
    %153 = arith.select %151, %141, %145 : vector<8x1xi1>, vector<8x1xi32>
    %c7_i32 = arith.constant 7 : i32
    %154 = arith.subi %153, %152 : vector<8x1xi32>
    %c1_i32_45 = arith.constant 1 : i32
    %155 = vector.broadcast %c1_i32_45 : i32 to vector<8x1xi32>
    %156 = arith.shrsi %154, %155 : vector<8x1xi32>
    %157 = arith.addi %152, %156 : vector<8x1xi32>
    %158 = vector.broadcast %157 : vector<8x1xi32> to vector<8x256xi32>
    %159 = arith.cmpi sge, %60, %158 : vector<8x256xi32>
    %160 = arith.extui %159 : vector<8x256xi1> to vector<8x256xi32>
    %cst_46 = arith.constant dense<0> : vector<8xi32>
    %161 = vector.multi_reduction <add>, %160, %cst_46 [1] : vector<8x256xi32> to vector<8xi32>
    %162 = vector.shape_cast %161 : vector<8xi32> to vector<8x1xi32>
    %163 = arith.cmpi sge, %162, %66 : vector<8x1xi32>
    %164 = arith.select %163, %157, %152 : vector<8x1xi1>, vector<8x1xi32>
    %165 = arith.select %163, %153, %157 : vector<8x1xi1>, vector<8x1xi32>
    %c8_i32 = arith.constant 8 : i32
    %166 = arith.subi %165, %164 : vector<8x1xi32>
    %c1_i32_47 = arith.constant 1 : i32
    %167 = vector.broadcast %c1_i32_47 : i32 to vector<8x1xi32>
    %168 = arith.shrsi %166, %167 : vector<8x1xi32>
    %169 = arith.addi %164, %168 : vector<8x1xi32>
    %170 = vector.broadcast %169 : vector<8x1xi32> to vector<8x256xi32>
    %171 = arith.cmpi sge, %60, %170 : vector<8x256xi32>
    %172 = arith.extui %171 : vector<8x256xi1> to vector<8x256xi32>
    %cst_48 = arith.constant dense<0> : vector<8xi32>
    %173 = vector.multi_reduction <add>, %172, %cst_48 [1] : vector<8x256xi32> to vector<8xi32>
    %174 = vector.shape_cast %173 : vector<8xi32> to vector<8x1xi32>
    %175 = arith.cmpi sge, %174, %66 : vector<8x1xi32>
    %176 = arith.select %175, %169, %164 : vector<8x1xi1>, vector<8x1xi32>
    %177 = arith.select %175, %165, %169 : vector<8x1xi1>, vector<8x1xi32>
    %c9_i32 = arith.constant 9 : i32
    %178 = arith.subi %177, %176 : vector<8x1xi32>
    %c1_i32_49 = arith.constant 1 : i32
    %179 = vector.broadcast %c1_i32_49 : i32 to vector<8x1xi32>
    %180 = arith.shrsi %178, %179 : vector<8x1xi32>
    %181 = arith.addi %176, %180 : vector<8x1xi32>
    %182 = vector.broadcast %181 : vector<8x1xi32> to vector<8x256xi32>
    %183 = arith.cmpi sge, %60, %182 : vector<8x256xi32>
    %184 = arith.extui %183 : vector<8x256xi1> to vector<8x256xi32>
    %cst_50 = arith.constant dense<0> : vector<8xi32>
    %185 = vector.multi_reduction <add>, %184, %cst_50 [1] : vector<8x256xi32> to vector<8xi32>
    %186 = vector.shape_cast %185 : vector<8xi32> to vector<8x1xi32>
    %187 = arith.cmpi sge, %186, %66 : vector<8x1xi32>
    %188 = arith.select %187, %181, %176 : vector<8x1xi1>, vector<8x1xi32>
    %189 = arith.select %187, %177, %181 : vector<8x1xi1>, vector<8x1xi32>
    %c10_i32 = arith.constant 10 : i32
    %190 = arith.subi %189, %188 : vector<8x1xi32>
    %c1_i32_51 = arith.constant 1 : i32
    %191 = vector.broadcast %c1_i32_51 : i32 to vector<8x1xi32>
    %192 = arith.shrsi %190, %191 : vector<8x1xi32>
    %193 = arith.addi %188, %192 : vector<8x1xi32>
    %194 = vector.broadcast %193 : vector<8x1xi32> to vector<8x256xi32>
    %195 = arith.cmpi sge, %60, %194 : vector<8x256xi32>
    %196 = arith.extui %195 : vector<8x256xi1> to vector<8x256xi32>
    %cst_52 = arith.constant dense<0> : vector<8xi32>
    %197 = vector.multi_reduction <add>, %196, %cst_52 [1] : vector<8x256xi32> to vector<8xi32>
    %198 = vector.shape_cast %197 : vector<8xi32> to vector<8x1xi32>
    %199 = arith.cmpi sge, %198, %66 : vector<8x1xi32>
    %200 = arith.select %199, %193, %188 : vector<8x1xi1>, vector<8x1xi32>
    %201 = arith.select %199, %189, %193 : vector<8x1xi1>, vector<8x1xi32>
    %c11_i32 = arith.constant 11 : i32
    %202 = arith.subi %201, %200 : vector<8x1xi32>
    %c1_i32_53 = arith.constant 1 : i32
    %203 = vector.broadcast %c1_i32_53 : i32 to vector<8x1xi32>
    %204 = arith.shrsi %202, %203 : vector<8x1xi32>
    %205 = arith.addi %200, %204 : vector<8x1xi32>
    %206 = vector.broadcast %205 : vector<8x1xi32> to vector<8x256xi32>
    %207 = arith.cmpi sge, %60, %206 : vector<8x256xi32>
    %208 = arith.extui %207 : vector<8x256xi1> to vector<8x256xi32>
    %cst_54 = arith.constant dense<0> : vector<8xi32>
    %209 = vector.multi_reduction <add>, %208, %cst_54 [1] : vector<8x256xi32> to vector<8xi32>
    %210 = vector.shape_cast %209 : vector<8xi32> to vector<8x1xi32>
    %211 = arith.cmpi sge, %210, %66 : vector<8x1xi32>
    %212 = arith.select %211, %205, %200 : vector<8x1xi1>, vector<8x1xi32>
    %213 = arith.select %211, %201, %205 : vector<8x1xi1>, vector<8x1xi32>
    %c12_i32 = arith.constant 12 : i32
    %214 = arith.subi %213, %212 : vector<8x1xi32>
    %c1_i32_55 = arith.constant 1 : i32
    %215 = vector.broadcast %c1_i32_55 : i32 to vector<8x1xi32>
    %216 = arith.shrsi %214, %215 : vector<8x1xi32>
    %217 = arith.addi %212, %216 : vector<8x1xi32>
    %218 = vector.broadcast %217 : vector<8x1xi32> to vector<8x256xi32>
    %219 = arith.cmpi sge, %60, %218 : vector<8x256xi32>
    %220 = arith.extui %219 : vector<8x256xi1> to vector<8x256xi32>
    %cst_56 = arith.constant dense<0> : vector<8xi32>
    %221 = vector.multi_reduction <add>, %220, %cst_56 [1] : vector<8x256xi32> to vector<8xi32>
    %222 = vector.shape_cast %221 : vector<8xi32> to vector<8x1xi32>
    %223 = arith.cmpi sge, %222, %66 : vector<8x1xi32>
    %224 = arith.select %223, %217, %212 : vector<8x1xi1>, vector<8x1xi32>
    %225 = arith.select %223, %213, %217 : vector<8x1xi1>, vector<8x1xi32>
    %c13_i32 = arith.constant 13 : i32
    %226 = arith.subi %225, %224 : vector<8x1xi32>
    %c1_i32_57 = arith.constant 1 : i32
    %227 = vector.broadcast %c1_i32_57 : i32 to vector<8x1xi32>
    %228 = arith.shrsi %226, %227 : vector<8x1xi32>
    %229 = arith.addi %224, %228 : vector<8x1xi32>
    %230 = vector.broadcast %229 : vector<8x1xi32> to vector<8x256xi32>
    %231 = arith.cmpi sge, %60, %230 : vector<8x256xi32>
    %232 = arith.extui %231 : vector<8x256xi1> to vector<8x256xi32>
    %cst_58 = arith.constant dense<0> : vector<8xi32>
    %233 = vector.multi_reduction <add>, %232, %cst_58 [1] : vector<8x256xi32> to vector<8xi32>
    %234 = vector.shape_cast %233 : vector<8xi32> to vector<8x1xi32>
    %235 = arith.cmpi sge, %234, %66 : vector<8x1xi32>
    %236 = arith.select %235, %229, %224 : vector<8x1xi1>, vector<8x1xi32>
    %237 = arith.select %235, %225, %229 : vector<8x1xi1>, vector<8x1xi32>
    %c14_i32 = arith.constant 14 : i32
    %238 = arith.subi %237, %236 : vector<8x1xi32>
    %c1_i32_59 = arith.constant 1 : i32
    %239 = vector.broadcast %c1_i32_59 : i32 to vector<8x1xi32>
    %240 = arith.shrsi %238, %239 : vector<8x1xi32>
    %241 = arith.addi %236, %240 : vector<8x1xi32>
    %242 = vector.broadcast %241 : vector<8x1xi32> to vector<8x256xi32>
    %243 = arith.cmpi sge, %60, %242 : vector<8x256xi32>
    %244 = arith.extui %243 : vector<8x256xi1> to vector<8x256xi32>
    %cst_60 = arith.constant dense<0> : vector<8xi32>
    %245 = vector.multi_reduction <add>, %244, %cst_60 [1] : vector<8x256xi32> to vector<8xi32>
    %246 = vector.shape_cast %245 : vector<8xi32> to vector<8x1xi32>
    %247 = arith.cmpi sge, %246, %66 : vector<8x1xi32>
    %248 = arith.select %247, %241, %236 : vector<8x1xi1>, vector<8x1xi32>
    %249 = arith.select %247, %237, %241 : vector<8x1xi1>, vector<8x1xi32>
    %c15_i32 = arith.constant 15 : i32
    %250 = arith.subi %249, %248 : vector<8x1xi32>
    %c1_i32_61 = arith.constant 1 : i32
    %251 = vector.broadcast %c1_i32_61 : i32 to vector<8x1xi32>
    %252 = arith.shrsi %250, %251 : vector<8x1xi32>
    %253 = arith.addi %248, %252 : vector<8x1xi32>
    %254 = vector.broadcast %253 : vector<8x1xi32> to vector<8x256xi32>
    %255 = arith.cmpi sge, %60, %254 : vector<8x256xi32>
    %256 = arith.extui %255 : vector<8x256xi1> to vector<8x256xi32>
    %cst_62 = arith.constant dense<0> : vector<8xi32>
    %257 = vector.multi_reduction <add>, %256, %cst_62 [1] : vector<8x256xi32> to vector<8xi32>
    %258 = vector.shape_cast %257 : vector<8xi32> to vector<8x1xi32>
    %259 = arith.cmpi sge, %258, %66 : vector<8x1xi32>
    %260 = arith.select %259, %253, %248 : vector<8x1xi1>, vector<8x1xi32>
    %261 = arith.select %259, %249, %253 : vector<8x1xi1>, vector<8x1xi32>
    %c16_i32 = arith.constant 16 : i32
    %262 = arith.subi %261, %260 : vector<8x1xi32>
    %c1_i32_63 = arith.constant 1 : i32
    %263 = vector.broadcast %c1_i32_63 : i32 to vector<8x1xi32>
    %264 = arith.shrsi %262, %263 : vector<8x1xi32>
    %265 = arith.addi %260, %264 : vector<8x1xi32>
    %266 = vector.broadcast %265 : vector<8x1xi32> to vector<8x256xi32>
    %267 = arith.cmpi sge, %60, %266 : vector<8x256xi32>
    %268 = arith.extui %267 : vector<8x256xi1> to vector<8x256xi32>
    %cst_64 = arith.constant dense<0> : vector<8xi32>
    %269 = vector.multi_reduction <add>, %268, %cst_64 [1] : vector<8x256xi32> to vector<8xi32>
    %270 = vector.shape_cast %269 : vector<8xi32> to vector<8x1xi32>
    %271 = arith.cmpi sge, %270, %66 : vector<8x1xi32>
    %272 = arith.select %271, %265, %260 : vector<8x1xi1>, vector<8x1xi32>
    %273 = arith.select %271, %261, %265 : vector<8x1xi1>, vector<8x1xi32>
    %c17_i32 = arith.constant 17 : i32
    %274 = arith.subi %273, %272 : vector<8x1xi32>
    %c1_i32_65 = arith.constant 1 : i32
    %275 = vector.broadcast %c1_i32_65 : i32 to vector<8x1xi32>
    %276 = arith.shrsi %274, %275 : vector<8x1xi32>
    %277 = arith.addi %272, %276 : vector<8x1xi32>
    %278 = vector.broadcast %277 : vector<8x1xi32> to vector<8x256xi32>
    %279 = arith.cmpi sge, %60, %278 : vector<8x256xi32>
    %280 = arith.extui %279 : vector<8x256xi1> to vector<8x256xi32>
    %cst_66 = arith.constant dense<0> : vector<8xi32>
    %281 = vector.multi_reduction <add>, %280, %cst_66 [1] : vector<8x256xi32> to vector<8xi32>
    %282 = vector.shape_cast %281 : vector<8xi32> to vector<8x1xi32>
    %283 = arith.cmpi sge, %282, %66 : vector<8x1xi32>
    %284 = arith.select %283, %277, %272 : vector<8x1xi1>, vector<8x1xi32>
    %285 = arith.select %283, %273, %277 : vector<8x1xi1>, vector<8x1xi32>
    %c18_i32 = arith.constant 18 : i32
    %286 = arith.subi %285, %284 : vector<8x1xi32>
    %c1_i32_67 = arith.constant 1 : i32
    %287 = vector.broadcast %c1_i32_67 : i32 to vector<8x1xi32>
    %288 = arith.shrsi %286, %287 : vector<8x1xi32>
    %289 = arith.addi %284, %288 : vector<8x1xi32>
    %290 = vector.broadcast %289 : vector<8x1xi32> to vector<8x256xi32>
    %291 = arith.cmpi sge, %60, %290 : vector<8x256xi32>
    %292 = arith.extui %291 : vector<8x256xi1> to vector<8x256xi32>
    %cst_68 = arith.constant dense<0> : vector<8xi32>
    %293 = vector.multi_reduction <add>, %292, %cst_68 [1] : vector<8x256xi32> to vector<8xi32>
    %294 = vector.shape_cast %293 : vector<8xi32> to vector<8x1xi32>
    %295 = arith.cmpi sge, %294, %66 : vector<8x1xi32>
    %296 = arith.select %295, %289, %284 : vector<8x1xi1>, vector<8x1xi32>
    %297 = arith.select %295, %285, %289 : vector<8x1xi1>, vector<8x1xi32>
    %c19_i32 = arith.constant 19 : i32
    %298 = arith.subi %297, %296 : vector<8x1xi32>
    %c1_i32_69 = arith.constant 1 : i32
    %299 = vector.broadcast %c1_i32_69 : i32 to vector<8x1xi32>
    %300 = arith.shrsi %298, %299 : vector<8x1xi32>
    %301 = arith.addi %296, %300 : vector<8x1xi32>
    %302 = vector.broadcast %301 : vector<8x1xi32> to vector<8x256xi32>
    %303 = arith.cmpi sge, %60, %302 : vector<8x256xi32>
    %304 = arith.extui %303 : vector<8x256xi1> to vector<8x256xi32>
    %cst_70 = arith.constant dense<0> : vector<8xi32>
    %305 = vector.multi_reduction <add>, %304, %cst_70 [1] : vector<8x256xi32> to vector<8xi32>
    %306 = vector.shape_cast %305 : vector<8xi32> to vector<8x1xi32>
    %307 = arith.cmpi sge, %306, %66 : vector<8x1xi32>
    %308 = arith.select %307, %301, %296 : vector<8x1xi1>, vector<8x1xi32>
    %309 = arith.select %307, %297, %301 : vector<8x1xi1>, vector<8x1xi32>
    %c20_i32 = arith.constant 20 : i32
    %310 = arith.subi %309, %308 : vector<8x1xi32>
    %c1_i32_71 = arith.constant 1 : i32
    %311 = vector.broadcast %c1_i32_71 : i32 to vector<8x1xi32>
    %312 = arith.shrsi %310, %311 : vector<8x1xi32>
    %313 = arith.addi %308, %312 : vector<8x1xi32>
    %314 = vector.broadcast %313 : vector<8x1xi32> to vector<8x256xi32>
    %315 = arith.cmpi sge, %60, %314 : vector<8x256xi32>
    %316 = arith.extui %315 : vector<8x256xi1> to vector<8x256xi32>
    %cst_72 = arith.constant dense<0> : vector<8xi32>
    %317 = vector.multi_reduction <add>, %316, %cst_72 [1] : vector<8x256xi32> to vector<8xi32>
    %318 = vector.shape_cast %317 : vector<8xi32> to vector<8x1xi32>
    %319 = arith.cmpi sge, %318, %66 : vector<8x1xi32>
    %320 = arith.select %319, %313, %308 : vector<8x1xi1>, vector<8x1xi32>
    %321 = arith.select %319, %309, %313 : vector<8x1xi1>, vector<8x1xi32>
    %c21_i32 = arith.constant 21 : i32
    %322 = arith.subi %321, %320 : vector<8x1xi32>
    %c1_i32_73 = arith.constant 1 : i32
    %323 = vector.broadcast %c1_i32_73 : i32 to vector<8x1xi32>
    %324 = arith.shrsi %322, %323 : vector<8x1xi32>
    %325 = arith.addi %320, %324 : vector<8x1xi32>
    %326 = vector.broadcast %325 : vector<8x1xi32> to vector<8x256xi32>
    %327 = arith.cmpi sge, %60, %326 : vector<8x256xi32>
    %328 = arith.extui %327 : vector<8x256xi1> to vector<8x256xi32>
    %cst_74 = arith.constant dense<0> : vector<8xi32>
    %329 = vector.multi_reduction <add>, %328, %cst_74 [1] : vector<8x256xi32> to vector<8xi32>
    %330 = vector.shape_cast %329 : vector<8xi32> to vector<8x1xi32>
    %331 = arith.cmpi sge, %330, %66 : vector<8x1xi32>
    %332 = arith.select %331, %325, %320 : vector<8x1xi1>, vector<8x1xi32>
    %333 = arith.select %331, %321, %325 : vector<8x1xi1>, vector<8x1xi32>
    %c22_i32 = arith.constant 22 : i32
    %334 = arith.subi %333, %332 : vector<8x1xi32>
    %c1_i32_75 = arith.constant 1 : i32
    %335 = vector.broadcast %c1_i32_75 : i32 to vector<8x1xi32>
    %336 = arith.shrsi %334, %335 : vector<8x1xi32>
    %337 = arith.addi %332, %336 : vector<8x1xi32>
    %338 = vector.broadcast %337 : vector<8x1xi32> to vector<8x256xi32>
    %339 = arith.cmpi sge, %60, %338 : vector<8x256xi32>
    %340 = arith.extui %339 : vector<8x256xi1> to vector<8x256xi32>
    %cst_76 = arith.constant dense<0> : vector<8xi32>
    %341 = vector.multi_reduction <add>, %340, %cst_76 [1] : vector<8x256xi32> to vector<8xi32>
    %342 = vector.shape_cast %341 : vector<8xi32> to vector<8x1xi32>
    %343 = arith.cmpi sge, %342, %66 : vector<8x1xi32>
    %344 = arith.select %343, %337, %332 : vector<8x1xi1>, vector<8x1xi32>
    %345 = arith.select %343, %333, %337 : vector<8x1xi1>, vector<8x1xi32>
    %c23_i32 = arith.constant 23 : i32
    %346 = arith.subi %345, %344 : vector<8x1xi32>
    %c1_i32_77 = arith.constant 1 : i32
    %347 = vector.broadcast %c1_i32_77 : i32 to vector<8x1xi32>
    %348 = arith.shrsi %346, %347 : vector<8x1xi32>
    %349 = arith.addi %344, %348 : vector<8x1xi32>
    %350 = vector.broadcast %349 : vector<8x1xi32> to vector<8x256xi32>
    %351 = arith.cmpi sge, %60, %350 : vector<8x256xi32>
    %352 = arith.extui %351 : vector<8x256xi1> to vector<8x256xi32>
    %cst_78 = arith.constant dense<0> : vector<8xi32>
    %353 = vector.multi_reduction <add>, %352, %cst_78 [1] : vector<8x256xi32> to vector<8xi32>
    %354 = vector.shape_cast %353 : vector<8xi32> to vector<8x1xi32>
    %355 = arith.cmpi sge, %354, %66 : vector<8x1xi32>
    %356 = arith.select %355, %349, %344 : vector<8x1xi1>, vector<8x1xi32>
    %357 = arith.select %355, %345, %349 : vector<8x1xi1>, vector<8x1xi32>
    %c24_i32 = arith.constant 24 : i32
    %358 = arith.subi %357, %356 : vector<8x1xi32>
    %c1_i32_79 = arith.constant 1 : i32
    %359 = vector.broadcast %c1_i32_79 : i32 to vector<8x1xi32>
    %360 = arith.shrsi %358, %359 : vector<8x1xi32>
    %361 = arith.addi %356, %360 : vector<8x1xi32>
    %362 = vector.broadcast %361 : vector<8x1xi32> to vector<8x256xi32>
    %363 = arith.cmpi sge, %60, %362 : vector<8x256xi32>
    %364 = arith.extui %363 : vector<8x256xi1> to vector<8x256xi32>
    %cst_80 = arith.constant dense<0> : vector<8xi32>
    %365 = vector.multi_reduction <add>, %364, %cst_80 [1] : vector<8x256xi32> to vector<8xi32>
    %366 = vector.shape_cast %365 : vector<8xi32> to vector<8x1xi32>
    %367 = arith.cmpi sge, %366, %66 : vector<8x1xi32>
    %368 = arith.select %367, %361, %356 : vector<8x1xi1>, vector<8x1xi32>
    %369 = arith.select %367, %357, %361 : vector<8x1xi1>, vector<8x1xi32>
    %c25_i32 = arith.constant 25 : i32
    %370 = arith.subi %369, %368 : vector<8x1xi32>
    %c1_i32_81 = arith.constant 1 : i32
    %371 = vector.broadcast %c1_i32_81 : i32 to vector<8x1xi32>
    %372 = arith.shrsi %370, %371 : vector<8x1xi32>
    %373 = arith.addi %368, %372 : vector<8x1xi32>
    %374 = vector.broadcast %373 : vector<8x1xi32> to vector<8x256xi32>
    %375 = arith.cmpi sge, %60, %374 : vector<8x256xi32>
    %376 = arith.extui %375 : vector<8x256xi1> to vector<8x256xi32>
    %cst_82 = arith.constant dense<0> : vector<8xi32>
    %377 = vector.multi_reduction <add>, %376, %cst_82 [1] : vector<8x256xi32> to vector<8xi32>
    %378 = vector.shape_cast %377 : vector<8xi32> to vector<8x1xi32>
    %379 = arith.cmpi sge, %378, %66 : vector<8x1xi32>
    %380 = arith.select %379, %373, %368 : vector<8x1xi1>, vector<8x1xi32>
    %381 = arith.select %379, %369, %373 : vector<8x1xi1>, vector<8x1xi32>
    %c26_i32 = arith.constant 26 : i32
    %382 = arith.subi %381, %380 : vector<8x1xi32>
    %c1_i32_83 = arith.constant 1 : i32
    %383 = vector.broadcast %c1_i32_83 : i32 to vector<8x1xi32>
    %384 = arith.shrsi %382, %383 : vector<8x1xi32>
    %385 = arith.addi %380, %384 : vector<8x1xi32>
    %386 = vector.broadcast %385 : vector<8x1xi32> to vector<8x256xi32>
    %387 = arith.cmpi sge, %60, %386 : vector<8x256xi32>
    %388 = arith.extui %387 : vector<8x256xi1> to vector<8x256xi32>
    %cst_84 = arith.constant dense<0> : vector<8xi32>
    %389 = vector.multi_reduction <add>, %388, %cst_84 [1] : vector<8x256xi32> to vector<8xi32>
    %390 = vector.shape_cast %389 : vector<8xi32> to vector<8x1xi32>
    %391 = arith.cmpi sge, %390, %66 : vector<8x1xi32>
    %392 = arith.select %391, %385, %380 : vector<8x1xi1>, vector<8x1xi32>
    %393 = arith.select %391, %381, %385 : vector<8x1xi1>, vector<8x1xi32>
    %c27_i32 = arith.constant 27 : i32
    %394 = arith.subi %393, %392 : vector<8x1xi32>
    %c1_i32_85 = arith.constant 1 : i32
    %395 = vector.broadcast %c1_i32_85 : i32 to vector<8x1xi32>
    %396 = arith.shrsi %394, %395 : vector<8x1xi32>
    %397 = arith.addi %392, %396 : vector<8x1xi32>
    %398 = vector.broadcast %397 : vector<8x1xi32> to vector<8x256xi32>
    %399 = arith.cmpi sge, %60, %398 : vector<8x256xi32>
    %400 = arith.extui %399 : vector<8x256xi1> to vector<8x256xi32>
    %cst_86 = arith.constant dense<0> : vector<8xi32>
    %401 = vector.multi_reduction <add>, %400, %cst_86 [1] : vector<8x256xi32> to vector<8xi32>
    %402 = vector.shape_cast %401 : vector<8xi32> to vector<8x1xi32>
    %403 = arith.cmpi sge, %402, %66 : vector<8x1xi32>
    %404 = arith.select %403, %397, %392 : vector<8x1xi1>, vector<8x1xi32>
    %405 = arith.select %403, %393, %397 : vector<8x1xi1>, vector<8x1xi32>
    %c28_i32 = arith.constant 28 : i32
    %406 = arith.subi %405, %404 : vector<8x1xi32>
    %c1_i32_87 = arith.constant 1 : i32
    %407 = vector.broadcast %c1_i32_87 : i32 to vector<8x1xi32>
    %408 = arith.shrsi %406, %407 : vector<8x1xi32>
    %409 = arith.addi %404, %408 : vector<8x1xi32>
    %410 = vector.broadcast %409 : vector<8x1xi32> to vector<8x256xi32>
    %411 = arith.cmpi sge, %60, %410 : vector<8x256xi32>
    %412 = arith.extui %411 : vector<8x256xi1> to vector<8x256xi32>
    %cst_88 = arith.constant dense<0> : vector<8xi32>
    %413 = vector.multi_reduction <add>, %412, %cst_88 [1] : vector<8x256xi32> to vector<8xi32>
    %414 = vector.shape_cast %413 : vector<8xi32> to vector<8x1xi32>
    %415 = arith.cmpi sge, %414, %66 : vector<8x1xi32>
    %416 = arith.select %415, %409, %404 : vector<8x1xi1>, vector<8x1xi32>
    %417 = arith.select %415, %405, %409 : vector<8x1xi1>, vector<8x1xi32>
    %c29_i32 = arith.constant 29 : i32
    %418 = arith.subi %417, %416 : vector<8x1xi32>
    %c1_i32_89 = arith.constant 1 : i32
    %419 = vector.broadcast %c1_i32_89 : i32 to vector<8x1xi32>
    %420 = arith.shrsi %418, %419 : vector<8x1xi32>
    %421 = arith.addi %416, %420 : vector<8x1xi32>
    %422 = vector.broadcast %421 : vector<8x1xi32> to vector<8x256xi32>
    %423 = arith.cmpi sge, %60, %422 : vector<8x256xi32>
    %424 = arith.extui %423 : vector<8x256xi1> to vector<8x256xi32>
    %cst_90 = arith.constant dense<0> : vector<8xi32>
    %425 = vector.multi_reduction <add>, %424, %cst_90 [1] : vector<8x256xi32> to vector<8xi32>
    %426 = vector.shape_cast %425 : vector<8xi32> to vector<8x1xi32>
    %427 = arith.cmpi sge, %426, %66 : vector<8x1xi32>
    %428 = arith.select %427, %421, %416 : vector<8x1xi1>, vector<8x1xi32>
    %429 = arith.select %427, %417, %421 : vector<8x1xi1>, vector<8x1xi32>
    %c30_i32 = arith.constant 30 : i32
    %430 = arith.subi %429, %428 : vector<8x1xi32>
    %c1_i32_91 = arith.constant 1 : i32
    %431 = vector.broadcast %c1_i32_91 : i32 to vector<8x1xi32>
    %432 = arith.shrsi %430, %431 : vector<8x1xi32>
    %433 = arith.addi %428, %432 : vector<8x1xi32>
    %434 = vector.broadcast %433 : vector<8x1xi32> to vector<8x256xi32>
    %435 = arith.cmpi sge, %60, %434 : vector<8x256xi32>
    %436 = arith.extui %435 : vector<8x256xi1> to vector<8x256xi32>
    %cst_92 = arith.constant dense<0> : vector<8xi32>
    %437 = vector.multi_reduction <add>, %436, %cst_92 [1] : vector<8x256xi32> to vector<8xi32>
    %438 = vector.shape_cast %437 : vector<8xi32> to vector<8x1xi32>
    %439 = arith.cmpi sge, %438, %66 : vector<8x1xi32>
    %440 = arith.select %439, %433, %428 : vector<8x1xi1>, vector<8x1xi32>
    %441 = arith.select %439, %429, %433 : vector<8x1xi1>, vector<8x1xi32>
    %c31_i32 = arith.constant 31 : i32
    %442 = arith.subi %441, %440 : vector<8x1xi32>
    %c1_i32_93 = arith.constant 1 : i32
    %443 = vector.broadcast %c1_i32_93 : i32 to vector<8x1xi32>
    %444 = arith.shrsi %442, %443 : vector<8x1xi32>
    %445 = arith.addi %440, %444 : vector<8x1xi32>
    %446 = vector.broadcast %445 : vector<8x1xi32> to vector<8x256xi32>
    %447 = arith.cmpi sge, %60, %446 : vector<8x256xi32>
    %448 = arith.extui %447 : vector<8x256xi1> to vector<8x256xi32>
    %cst_94 = arith.constant dense<0> : vector<8xi32>
    %449 = vector.multi_reduction <add>, %448, %cst_94 [1] : vector<8x256xi32> to vector<8xi32>
    %450 = vector.shape_cast %449 : vector<8xi32> to vector<8x1xi32>
    %451 = arith.cmpi sge, %450, %66 : vector<8x1xi32>
    %452 = arith.select %451, %445, %440 : vector<8x1xi1>, vector<8x1xi32>
    %453 = arith.select %451, %441, %445 : vector<8x1xi1>, vector<8x1xi32>
    %454 = vector.broadcast %452 : vector<8x1xi32> to vector<8x256xi32>
    %455 = arith.cmpi sgt, %60, %454 : vector<8x256xi32>
    %cst_95 = arith.constant 0.000000e+00 : f32
    %456 = vector.broadcast %cst_95 : f32 to vector<8x256xf32>
    %457 = arith.select %455, %456, %59 : vector<8x256xi1>, vector<8x256xf32>
    %cst_96 = arith.constant dense<0xFF800000> : vector<8xf32>
    %458 = vector.multi_reduction <maximumf>, %457, %cst_96 [1] : vector<8x256xf32> to vector<8xf32>
    %459 = vector.shape_cast %458 : vector<8xf32> to vector<8x1xf32>
    %460 = arith.extui %455 : vector<8x256xi1> to vector<8x256xi32>
    %cst_97 = arith.constant dense<0> : vector<8xi32>
    %461 = vector.multi_reduction <add>, %460, %cst_97 [1] : vector<8x256xi32> to vector<8xi32>
    %462 = vector.shape_cast %461 : vector<8xi32> to vector<8x1xi32>
    %463 = arith.sitofp %462 : vector<8x1xi32> to vector<8x1xf32>
    %cst_98 = arith.constant 0.000000e+00 : f32
    %464 = vector.broadcast %cst_98 : f32 to vector<8x256xf32>
    %465 = arith.select %455, %59, %464 : vector<8x256xi1>, vector<8x256xf32>
    %cst_99 = arith.constant dense<0.000000e+00> : vector<8xf32>
    %466 = vector.multi_reduction <add>, %465, %cst_99 [1] : vector<8x256xf32> to vector<8xf32>
    %467 = vector.shape_cast %466 : vector<8xf32> to vector<8x1xf32>
    %468 = arith.subf %67, %463 : vector<8x1xf32>
    %469 = arith.mulf %468, %459 : vector<8x1xf32>
    %470 = arith.addf %467, %469 : vector<8x1xf32>
    %471 = tpu.concatenate %8, %24, %57, %470 in 1 : vector<8x1xf32>, vector<8x1xf32>, vector<8x1xf32>, vector<8x1xf32> -> vector<8x4xf32>
    %c0_100 = arith.constant 0 : index
    %c0_101 = arith.constant 0 : index
    %472 = vector.load %arg6[%c0_100, %c0_101] : memref<8x4xf32, #tpu.memory_space<vmem>>, vector<8x4xf32>
    tpu.vector_store %arg6[%c0_100, %c0_101], %471 {strides = array<i32>} : memref<8x4xf32, #tpu.memory_space<vmem>>, vector<8x4xf32>,
    return
  }
  func.func @transform_0(%arg0: i32) -> (i32, i32) {
    %c0_i32 = arith.constant 0 : i32
    %c0_i32_0 = arith.constant 0 : i32
    return %arg0, %c0_i32 : i32, i32
  }
  func.func @transform_1(%arg0: i32) -> (i32, i32) {
    %c0_i32 = arith.constant 0 : i32
    %c0_i32_0 = arith.constant 0 : i32
    return %arg0, %c0_i32 : i32, i32
  }
  func.func @transform_2(%arg0: i32) -> (i32, i32) {
    %c0_i32 = arith.constant 0 : i32
    %c0_i32_0 = arith.constant 0 : i32
    return %arg0, %c0_i32 : i32, i32
  }
  func.func @transform_3(%arg0: i32) -> (i32, i32, i32) {
    %c0_i32 = arith.constant 0 : i32
    %c0_i32_0 = arith.constant 0 : i32
    %c0_i32_1 = arith.constant 0 : i32
    return %c0_i32, %arg0, %c0_i32_0 : i32, i32, i32
  }
  func.func @transform_4(%arg0: i32) -> (i32, i32) {
    %c0_i32 = arith.constant 0 : i32
    %c0_i32_0 = arith.constant 0 : i32
    return %arg0, %c0_i32 : i32, i32
  }
  func.func @transform_5(%arg0: i32) -> (i32, i32) {
    %c0_i32 = arith.constant 0 : i32
    %c0_i32_0 = arith.constant 0 : i32
    return %arg0, %c0_i32 : i32, i32
  }
}

</mosaic_0001>

<bundles_post_ra>
// kernel: detection_loss.1
= control target key start
LH: loop header
LB: loop body
LE: loop exit
PB: predicated region body
PF: predicated region fallthrough
CT: control target
= control target key end

     0   :  { %s1519_s18 = smov 0   ;;  %s1521_s19 = smov 0   ;;  %s1861_s0 = inlined_call_operand.vmem [shape: f32[16,1024], index: 0, kind: input, shape index: {}]   ;;  %s1862_s1 = inlined_call_operand.vmem [shape: f32[16,1024], index: 1, kind: input, shape index: {}]   ;;  %s1863_s2 = inlined_call_operand.vmem [shape: f32[16,1024], index: 2, kind: input, shape index: {}]   ;;  %s1864_s3 = inlined_call_operand.vmem [shape: f32[2,16,256], index: 3, kind: input, shape index: {}]   ;;  %s1865_s4 = inlined_call_operand.vmem [shape: s32[16,256], index: 4, kind: input, shape index: {}]   ;;  %s1866_s5 = inlined_call_operand.vmem [shape: f32[16,4], index: 5, kind: output, shape index: {}]  }
   0x1   :  { %s1523_s20 = smov 0  }
   0x2 LB: > { %s1386_s21 = sadd.s32 4294967295, %s1484_s20   ;;  %s1536_s22 = sadd.s32 1, %s1484_s20   ;;  %s1484_s20 = sphi %s1523_s20, %s1869_s20   ;;  %s1480_s19 = sphi %s1521_s19, %s1868_s19   ;;  %s1476_s18 = sphi %s1519_s18, %s1867_s18  }
   0x3   : > { %s97_s23 = ssub.s32 %s1484_s20, %s1536_s22  ;;  %s100_s24 = sadd.s32 1, %s1480_s19 }
   0x4   : > { %p98_p0 = scmp.eq.s32.totalorder %s97_s23, 0  ;;  %p107_p1 = scmp.ne.s32.totalorder %s1480_s19, %s1476_s18 }
   0x5   : > { %p108_p2 = scmp.eq.s32.totalorder %s1484_s20, 0  ;;  %p1389_p4 = scmp.ge.s32.totalorder %s1484_s20, 2 }
   0x6   : > { %s1545_s25 = scalar_select %p98_p0, %s1480_s19, %s100_s24  }
   0x7   : > { %p109_p3 = por %p108_p2, %p107_p1  ;;  %185 = sbr.rel (%p1389_p4) target bundleno = 20 (0x14), region = 16 }
   0xc   : > { %212 = sbr.rel (!%p109_p3) target bundleno = 20 (0x14), region = 32  ;;  %s214_s26 = sand.u32 (%p109_p3), 1, %s1480_s19  }
   0xd   : > { %s1418_s27 = sshll.u32 (%p109_p3), %s1484_s20, 4  ;;  %s1390_s28 = sshll.u32 (%p109_p3), %s214_s26, 5 }
   0xe   : > { %s219_s6 = scalar_lea.vmem (%p109_p3), %s1864_s3, %s1418_s27  ;;  %s216_s7 = scalar_lea.vmem (%p109_p3), [#allocation2], %s1390_s28 }
   0xf   : > { %v232_v0 = vld [vmem:[%s219_s6] sm:$0xff] (%p109_p3)  ;;  %v234_v1 = vld [vmem:[%s219_s6 + $0x8] sm:$0xff] (%p109_p3) }
  0x10   : > { %v236_v2 = vld [vmem:[%s219_s6 + $0x20] sm:$0xff] (%p109_p3)  ;;  %233 = vst [vmem:[%s216_s7] sm:$0xff] (%p109_p3), %v232_v0  ;;  %v238_v3 = vld [vmem:[%s219_s6 + $0x28] sm:$0xff] (%p109_p3) }
  0x11   : > { %235 = vst [vmem:[%s216_s7 + $0x8] sm:$0xff] %v234_v1 }
  0x12   : > { %237 = vst [vmem:[%s216_s7 + $0x10] sm:$0xff] %v236_v2 }
  0x13   : > { %239 = vst [vmem:[%s216_s7 + $0x18] sm:$0xff] %v238_v3 }
  0x14 PF: > { %p1393_p5 = scmp.ge.s32.totalorder %s1484_s20, 1  ;;  %p252_p6 = scmp.lt.s32.totalorder %s1484_s20, 3 }
  0x16   : > { %p253_p7 = pnand %p1393_p5, %p252_p6 }
  0x17   : > { %p305_p8 = scmp.lt.s32.totalorder (!%p253_p7), %s1386_s21, 1  ;;  %s259_s8 = sand.u32 (!%p253_p7), 1, %s1476_s18  }
  0x18   : > { %256 = sbr.rel (%p253_p7) target bundleno = 4627 (0x1213), region = 59  ;;  %s1394_s9 = sshll.u32 (!%p253_p7), %s259_s8, 5 }
  0x19   : > { %s261_s11 = scalar_lea.vmem (!%p253_p7), [#allocation2], %s1394_s9 }
  0x1d   : > { %s1871_s21 = smov (!%p305_p8, %s1386_s21), 1  ;;  %v448_v4 = vld [vmem:[%s261_s11] sm:$0xff]  ;;  %v449_v5 = vld [vmem:[%s261_s11 + $0x8] sm:$0xff]  ;;  %v1414_v6 = vld [vmem:[%s261_s11 + $0x10] sm:$0xff]  ;;  %v1486_v12 = vmov 0  }
  0x1e   : > { %s1422_s10 = sshll.u32 %s1871_s21, 4  ;;  %v1415_v7 = vld [vmem:[%s261_s11 + $0x18] sm:$0xff]  ;;  %v453_v8 = vmax.f32 %v448_v4, %v1414_v6  ;;  %s1772_s15 = sshll.u32 %s1871_s21, 6 }
  0x1f   : > { %s324_s14 = scalar_lea.vmem %s1865_s4, %s1422_s10  ;;  %v454_v11 = vmax.f32 %v449_v5, %v1415_v7  ;;  %s1778_s18 = scalar_lea.vmem %s1861_s0, %s1772_s15 }
  0x20   : > { %v1566_v9 = vld [vmem:[%s324_s14] sm:$0xff]  ;;  %v1568_v10 = vld [vmem:[%s324_s14 + $0x8] sm:$0xff]  ;;  %v455_v16 = vsub.f32 %v448_v4, %v453_v8  ;;  %v465_v18 = vsub.f32 %v1414_v6, %v453_v8  ;;  %s1784_s24 = scalar_lea.vmem %s1862_s1, %s1772_s15  ;;  %s1802_s28 = scalar_lea.vmem %s1863_s2, %s1772_s15 }
  0x21   : > { %vm331_vm0 = vcmp.gt.s32.totalorder %v1566_v9, 0  ;;  %vm332_vm1 = vcmp.gt.s32.totalorder %v1568_v10, 0  ;;  %v456_v17 = vsub.f32 %v449_v5, %v454_v11  ;;  %v466_v21 = vsub.f32 %v1415_v7, %v454_v11  ;;  %s1403_s29 = sshll.u32 %s1871_s21, 3 }
  0x22   : > { %v333_v13 = vsel %vm331_vm0, 1, %v1486_v12  ;;  %v334_v14 = vsel %vm332_vm1, 1, %v1486_v12  ;;  %v457_v20 = vmul.f32 1.442695, %v455_v16  ;;  %v467_v23 = vmul.f32 1.442695, %v465_v18  ;;  %s328_s7 = scalar_lea.vmem %s1866_s5, %s1403_s29 }
  0x23   : > { %v337_v15 = vadd.s32 %v334_v14, %v333_v13  ;;  %v459_v22 = vmul.f32 1.442695, %v456_v17  ;;  %v469_v25 = vmul.f32 1.442695, %v466_v21  ;;  %vm461_vm2 = vcmp.eq.s32.totalorder %v1566_v9, 0 }
  0x24   : > { %1450 = vpow2.f32 %v457_v20  ;;  %vm473_vm3 = vcmp.eq.s32.totalorder %v1566_v9, 1  ;;  %vm462_vm4 = vcmp.eq.s32.totalorder %v1568_v10, 0  ;;  %vm474_vm5 = vcmp.eq.s32.totalorder %v1568_v10, 1 }
  0x25   : > { %v339_v19 = vshrl.u32 %v337_v15, 16  ;;  %1452 = vpow2.f32 %v459_v22  ;;  %v338_v26 = vand.u32 65535, %v337_v15  ;;  %v463_v34 = vsel %vm461_vm2, %v448_v4, 0.0 }
  0x26   : > { %1454 = vpow2.f32 %v467_v23  ;;  %v475_v35 = vsel %vm473_vm3, %v1414_v6, 0.0  ;;  %v464_v36 = vsel %vm462_vm4, %v449_v5, 0.0  ;;  %v476_v37 = vsel %vm474_vm5, %v1415_v7, 0.0 }
  0x27   : > { %v341_v24 = vcvt.s32.f32 %v339_v19  ;;  %1456 = vpow2.f32 %v469_v25  ;;  %v340_v28 = vcvt.s32.f32 %v338_v26  ;;  %v477_v40 = vadd.f32 %v475_v35, %v463_v34 }
  0x28   : > { %v478_v42 = vadd.f32 %v476_v37, %v464_v36  ;;  %vm489_vm6 = vcmp.eq.s32.totalorder %v1566_v9, 4294967295  ;;  %vm490_vm7 = vcmp.eq.s32.totalorder %v1568_v10, 4294967295  ;;  %v1487_v16 = vmov 1069547520  }
  0x29   : > { %344 = vadd.xlane.f32.xlu0 %v341_v24 }
  0x2a   : > { %v1451_v27 = vpop.eup %1450 }
  0x2b   : > { %v1453_v29 = vpop.eup %1452 }
  0x2c   : > { %v1455_v30 = vpop.eup %1454 }
  0x2d   : > { %v1457_v31 = vpop.eup %1456  ;;  %v471_v32 = vadd.f32 %v1455_v30, %v1451_v27 }
  0x2e   : > { %v472_v33 = vadd.f32 %v1457_v31, %v1453_v29 }
  0x2f   : > { %1458 = vlog2.f32 %v471_v32 }
  0x30   : > { %1460 = vlog2.f32 %v472_v33 }
  0x31   : > { %342 = vadd.xlane.f32.xlu0 %v340_v28 }
  0x35   : > { %v1459_v38 = vpop.eup %1458 }
  0x36   : > { %v1461_v39 = vpop.eup %1460  ;;  %v480_v41 = vmul.f32 0.6931472, %v1459_v38 }
  0x37   : > { %v482_v43 = vmul.f32 0.6931472, %v1461_v39 }
  0x38   : > { %v483_v44 = vadd.f32 %v480_v41, %v453_v8 }
  0x39   : > { %v484_v45 = vadd.f32 %v482_v43, %v454_v11 }
  0x3a   : > { %v485_v46 = vsub.f32 %v483_v44, %v477_v40 }
  0x3b   : > { %v486_v47 = vsub.f32 %v484_v45, %v478_v42 }
  0x3c   : > { %v487_v48 = vmax.f32 %v485_v46, 0.0 }
  0x3d   : > { %v488_v49 = vmax.f32 %v486_v47, 0.0 }
  0x3e   : > { %v1584_v50 = vsel %vm489_vm6, 0.0, %v487_v48 }
  0x3f   : > { %v1586_v51 = vsel %vm490_vm7, 0.0, %v488_v49  ;;  %v1591_v52 = vsel %vm331_vm0, 0.0, %v1584_v50 }
  0x40   : > { %v1596_v53 = vsel %vm332_vm1, 0.0, %v1586_v51  ;;  %vm508_vm8 = vcmp.ge.s32.totalorder %v1591_v52, 1069547520 }
  0x41   : > { %vm509_vm9 = vcmp.ge.s32.totalorder %v1596_v53, 1069547520  ;;  %v510_v54 = vsel %vm508_vm8, 1, %v1486_v12 }
  0x42   : > { %v511_v55 = vsel %vm509_vm9, 1, %v1486_v12 }
  0x43   : > { %v512_v56 = vadd.s32 %v511_v55, %v510_v54 }
  0x45   : > { %v514_v57 = vshrl.u32 %v512_v56, 16  ;;  %v513_v59 = vand.u32 65535, %v512_v56 }
  0x47   : > { %v516_v58 = vcvt.s32.f32 %v514_v57  ;;  %v515_v60 = vcvt.s32.f32 %v513_v59 }
  0x49   : > { %519 = vadd.xlane.f32.xlu1 %v516_v58 }
  0x51   : > { %517 = vadd.xlane.f32.xlu1 %v515_v60 }
  0x9c   : > { %v345_v61 = vpop.xlane.xlu0 %344 }
  0x9d   : > { %v347_v62 = vcvt.f32.s32 %v345_v61 }
  0x9f   : > { %v348_v0 = vshll.u32 %v347_v62, 16 }
  0xa4   : > { %v343_v63 = vpop.xlane.xlu0 %342 }
  0xa5   : > { %v346_v1 = vcvt.f32.s32 %v343_v63 }
  0xa7   : > { %v1602_v2 = vadd.s32 %v348_v0, %v346_v1 }
  0xa9   : > { %v502_v3 = vmul.u32 3, %v1602_v2 }
  0xab   : > { %vm503_vm10 = vcmp.gt.s32.totalorder %v502_v3, 1 }
  0xac   : > { %v504_v6 = vsel %vm503_vm10, %v502_v3, 1 }
  0xad   : > { %vm505_vm11 = vcmp.lt.s32.totalorder %v504_v6, 255 }
  0xae   : > { %v1605_v14 = vsel %vm505_vm11, %v504_v6, 255 }
  0xbc   : > { %v520_v4 = vpop.xlane.xlu1 %519 }
  0xbd   : > { %v522_v5 = vcvt.f32.s32 %v520_v4 }
  0xbf   : > { %v523_v8 = vshll.u32 %v522_v5, 16 }
  0xc4   : > { %v518_v7 = vpop.xlane.xlu1 %517 }
  0xc5   : > { %v521_v11 = vcvt.f32.s32 %v518_v7 }
  0xc7   : > { %v524_v13 = vadd.s32 %v523_v8, %v521_v11 }
  0xc9   : > { %vm525_vm12 = vcmp.ge.s32.totalorder %v524_v13, %v1605_v14 }
  0xca   : > { %v526_v15 = vsel %vm525_vm12, 1069547520, %v1486_v12  ;;  %v527_v17 = vsel %vm525_vm12, 2139095040, %v1487_v16 }
  0xcb   : > { %v528_v18 = vsub.s32 %v527_v17, %v526_v15 }
  0xcd   : > { %v529_v19 = vshra.s32 %v528_v18, 1 }
  0xcf   : > { %v530_v20 = vadd.s32 %v529_v19, %v526_v15 }
  0xd1   : > { %vm531_vm13 = vcmp.ge.s32.totalorder %v1591_v52, %v530_v20  ;;  %vm532_vm14 = vcmp.ge.s32.totalorder %v1596_v53, %v530_v20 }
  0xd2   : > { %v533_v21 = vsel %vm531_vm13, 1, %v1486_v12  ;;  %v534_v22 = vsel %vm532_vm14, 1, %v1486_v12 }
  0xd3   : > { %v535_v23 = vadd.s32 %v534_v22, %v533_v21 }
  0xd5   : > { %v537_v24 = vshrl.u32 %v535_v23, 16  ;;  %v536_v26 = vand.u32 65535, %v535_v23 }
  0xd7   : > { %v539_v25 = vcvt.s32.f32 %v537_v24  ;;  %v538_v27 = vcvt.s32.f32 %v536_v26 }
  0xd9   : > { %542 = vadd.xlane.f32.xlu2 %v539_v25 }
  0xe1   : > { %540 = vadd.xlane.f32.xlu2 %v538_v27 }
 0x14c   : > { %v543_v28 = vpop.xlane.xlu2 %542 }
 0x14d   : > { %v545_v29 = vcvt.f32.s32 %v543_v28 }
 0x14f   : > { %v546_v31 = vshll.u32 %v545_v29, 16 }
 0x154   : > { %v541_v30 = vpop.xlane.xlu2 %540 }
 0x155   : > { %v544_v32 = vcvt.f32.s32 %v541_v30 }
 0x157   : > { %v547_v33 = vadd.s32 %v546_v31, %v544_v32 }
 0x159   : > { %vm548_vm15 = vcmp.ge.s32.totalorder %v547_v33, %v1605_v14 }
 0x15a   : > { %v549_v34 = vsel %vm548_vm15, %v530_v20, %v526_v15  ;;  %v550_v35 = vsel %vm548_vm15, %v527_v17, %v530_v20 }
 0x15b   : > { %v551_v36 = vsub.s32 %v550_v35, %v549_v34 }
 0x15d   : > { %v552_v37 = vshra.s32 %v551_v36, 1 }
 0x15f   : > { %v553_v38 = vadd.s32 %v552_v37, %v549_v34 }
 0x161   : > { %vm554_vm2 = vcmp.ge.s32.totalorder %v1591_v52, %v553_v38  ;;  %vm555_vm3 = vcmp.ge.s32.totalorder %v1596_v53, %v553_v38 }
 0x162   : > { %v556_v39 = vsel %vm554_vm2, 1, %v1486_v12  ;;  %v557_v40 = vsel %vm555_vm3, 1, %v1486_v12 }
 0x163   : > { %v558_v41 = vadd.s32 %v557_v40, %v556_v39 }
 0x165   : > { %v560_v42 = vshrl.u32 %v558_v41, 16  ;;  %v559_v43 = vand.u32 65535, %v558_v41 }
 0x167   : > { %v562_v44 = vcvt.s32.f32 %v560_v42  ;;  %v561_v45 = vcvt.s32.f32 %v559_v43 }
 0x169   : > { %565 = vadd.xlane.f32.xlu0 %v562_v44  ;;  %563 = vadd.xlane.f32.xlu1 %v561_v45 }
 0x1dc   : > { %v566_v46 = vpop.xlane.xlu0 %565  ;;  %v564_v47 = vpop.xlane.xlu1 %563 }
 0x1dd   : > { %v568_v48 = vcvt.f32.s32 %v566_v46  ;;  %v567_v54 = vcvt.f32.s32 %v564_v47 }
 0x1df   : > { %v569_v49 = vshll.u32 %v568_v48, 16 }
 0x1e1   : > { %v570_v55 = vadd.s32 %v569_v49, %v567_v54 }
 0x1e3   : > { %vm571_vm4 = vcmp.ge.s32.totalorder %v570_v55, %v1605_v14 }
 0x1e4   : > { %v572_v56 = vsel %vm571_vm4, %v553_v38, %v549_v34  ;;  %v573_v57 = vsel %vm571_vm4, %v550_v35, %v553_v38 }
 0x1e5   : > { %v574_v58 = vsub.s32 %v573_v57, %v572_v56 }
 0x1e7   : > { %v575_v59 = vshra.s32 %v574_v58, 1 }
 0x1e9   : > { %v576_v60 = vadd.s32 %v575_v59, %v572_v56 }
 0x1eb   : > { %vm577_vm5 = vcmp.ge.s32.totalorder %v1591_v52, %v576_v60  ;;  %vm578_vm6 = vcmp.ge.s32.totalorder %v1596_v53, %v576_v60 }
 0x1ec   : > { %v579_v61 = vsel %vm577_vm5, 1, %v1486_v12  ;;  %v580_v62 = vsel %vm578_vm6, 1, %v1486_v12 }
 0x1ed   : > { %v581_v63 = vadd.s32 %v580_v62, %v579_v61 }
 0x1ef   : > { %v583_v0 = vshrl.u32 %v581_v63, 16  ;;  %v582_v1 = vand.u32 65535, %v581_v63 }
 0x1f1   : > { %v585_v3 = vcvt.s32.f32 %v583_v0  ;;  %v584_v4 = vcvt.s32.f32 %v582_v1 }
 0x1f3   : > { %588 = vadd.xlane.f32.xlu2 %v585_v3  ;;  %586 = vadd.xlane.f32.xlu0 %v584_v4 }
 0x266   : > { %v589_v5 = vpop.xlane.xlu2 %588  ;;  %v587_v6 = vpop.xlane.xlu0 %586 }
 0x267   : > { %v591_v7 = vcvt.f32.s32 %v589_v5  ;;  %v590_v11 = vcvt.f32.s32 %v587_v6 }
 0x269   : > { %v592_v8 = vshll.u32 %v591_v7, 16 }
 0x26b   : > { %v593_v13 = vadd.s32 %v592_v8, %v590_v11 }
 0x26d   : > { %vm594_vm7 = vcmp.ge.s32.totalorder %v593_v13, %v1605_v14 }
 0x26e   : > { %v595_v15 = vsel %vm594_vm7, %v576_v60, %v572_v56  ;;  %v596_v16 = vsel %vm594_vm7, %v573_v57, %v576_v60 }
 0x26f   : > { %v597_v17 = vsub.s32 %v596_v16, %v595_v15 }
 0x271   : > { %v598_v18 = vshra.s32 %v597_v17, 1 }
 0x273   : > { %v599_v19 = vadd.s32 %v598_v18, %v595_v15 }
 0x275   : > { %vm600_vm8 = vcmp.ge.s32.totalorder %v1591_v52, %v599_v19  ;;  %vm601_vm9 = vcmp.ge.s32.totalorder %v1596_v53, %v599_v19 }
 0x276   : > { %v602_v20 = vsel %vm600_vm8, 1, %v1486_v12  ;;  %v603_v21 = vsel %vm601_vm9, 1, %v1486_v12 }
 0x277   : > { %v604_v22 = vadd.s32 %v603_v21, %v602_v20 }
 0x279   : > { %v606_v23 = vshrl.u32 %v604_v22, 16  ;;  %v605_v24 = vand.u32 65535, %v604_v22 }
 0x27b   : > { %v608_v25 = vcvt.s32.f32 %v606_v23  ;;  %v607_v26 = vcvt.s32.f32 %v605_v24 }
 0x27d   : > { %611 = vadd.xlane.f32.xlu1 %v608_v25  ;;  %609 = vadd.xlane.f32.xlu2 %v607_v26 }
 0x2f0   : > { %v612_v27 = vpop.xlane.xlu1 %611  ;;  %v610_v28 = vpop.xlane.xlu2 %609 }
 0x2f1   : > { %v614_v29 = vcvt.f32.s32 %v612_v27  ;;  %v613_v31 = vcvt.f32.s32 %v610_v28 }
 0x2f3   : > { %v615_v30 = vshll.u32 %v614_v29, 16 }
 0x2f5   : > { %v616_v32 = vadd.s32 %v615_v30, %v613_v31 }
 0x2f7   : > { %vm617_vm10 = vcmp.ge.s32.totalorder %v616_v32, %v1605_v14 }
 0x2f8   : > { %v618_v33 = vsel %vm617_vm10, %v599_v19, %v595_v15  ;;  %v619_v34 = vsel %vm617_vm10, %v596_v16, %v599_v19 }
 0x2f9   : > { %v620_v35 = vsub.s32 %v619_v34, %v618_v33 }
 0x2fb   : > { %v621_v36 = vshra.s32 %v620_v35, 1 }
 0x2fd   : > { %v622_v37 = vadd.s32 %v621_v36, %v618_v33 }
 0x2ff   : > { %vm623_vm11 = vcmp.ge.s32.totalorder %v1591_v52, %v622_v37  ;;  %vm624_vm12 = vcmp.ge.s32.totalorder %v1596_v53, %v622_v37 }
 0x300   : > { %v625_v38 = vsel %vm623_vm11, 1, %v1486_v12  ;;  %v626_v39 = vsel %vm624_vm12, 1, %v1486_v12 }
 0x301   : > { %v627_v40 = vadd.s32 %v626_v39, %v625_v38 }
 0x303   : > { %v629_v41 = vshrl.u32 %v627_v40, 16  ;;  %v628_v42 = vand.u32 65535, %v627_v40 }
 0x305   : > { %v631_v43 = vcvt.s32.f32 %v629_v41  ;;  %v630_v44 = vcvt.s32.f32 %v628_v42 }
 0x307   : > { %634 = vadd.xlane.f32.xlu0 %v631_v43  ;;  %632 = vadd.xlane.f32.xlu1 %v630_v44 }
 0x37a   : > { %v635_v45 = vpop.xlane.xlu0 %634  ;;  %v633_v46 = vpop.xlane.xlu1 %632 }
 0x37b   : > { %v637_v47 = vcvt.f32.s32 %v635_v45  ;;  %v636_v49 = vcvt.f32.s32 %v633_v46 }
 0x37d   : > { %v638_v48 = vshll.u32 %v637_v47, 16 }
 0x37f   : > { %v639_v54 = vadd.s32 %v638_v48, %v636_v49 }
 0x381   : > { %vm640_vm13 = vcmp.ge.s32.totalorder %v639_v54, %v1605_v14 }
 0x382   : > { %v641_v55 = vsel %vm640_vm13, %v622_v37, %v618_v33  ;;  %v642_v56 = vsel %vm640_vm13, %v619_v34, %v622_v37 }
 0x383   : > { %v643_v57 = vsub.s32 %v642_v56, %v641_v55 }
 0x385   : > { %v644_v58 = vshra.s32 %v643_v57, 1 }
 0x387   : > { %v645_v59 = vadd.s32 %v644_v58, %v641_v55 }
 0x389   : > { %vm646_vm14 = vcmp.ge.s32.totalorder %v1591_v52, %v645_v59  ;;  %vm647_vm15 = vcmp.ge.s32.totalorder %v1596_v53, %v645_v59 }
 0x38a   : > { %v648_v60 = vsel %vm646_vm14, 1, %v1486_v12  ;;  %v649_v61 = vsel %vm647_vm15, 1, %v1486_v12 }
 0x38b   : > { %v650_v62 = vadd.s32 %v649_v61, %v648_v60 }
 0x38d   : > { %v652_v63 = vshrl.u32 %v650_v62, 16  ;;  %v651_v0 = vand.u32 65535, %v650_v62 }
 0x38f   : > { %v654_v1 = vcvt.s32.f32 %v652_v63  ;;  %v653_v3 = vcvt.s32.f32 %v651_v0 }
 0x391   : > { %657 = vadd.xlane.f32.xlu2 %v654_v1  ;;  %655 = vadd.xlane.f32.xlu0 %v653_v3 }
 0x404   : > { %v658_v4 = vpop.xlane.xlu2 %657  ;;  %v656_v5 = vpop.xlane.xlu0 %655 }
 0x405   : > { %v660_v6 = vcvt.f32.s32 %v658_v4  ;;  %v659_v8 = vcvt.f32.s32 %v656_v5 }
 0x407   : > { %v661_v7 = vshll.u32 %v660_v6, 16 }
 0x409   : > { %v662_v11 = vadd.s32 %v661_v7, %v659_v8 }
 0x40b   : > { %vm663_vm2 = vcmp.ge.s32.totalorder %v662_v11, %v1605_v14 }
 0x40c   : > { %v664_v13 = vsel %vm663_vm2, %v645_v59, %v641_v55  ;;  %v665_v15 = vsel %vm663_vm2, %v642_v56, %v645_v59 }
 0x40d   : > { %v666_v16 = vsub.s32 %v665_v15, %v664_v13 }
 0x40f   : > { %v667_v17 = vshra.s32 %v666_v16, 1 }
 0x411   : > { %v668_v18 = vadd.s32 %v667_v17, %v664_v13 }
 0x413   : > { %vm669_vm3 = vcmp.ge.s32.totalorder %v1591_v52, %v668_v18  ;;  %vm670_vm4 = vcmp.ge.s32.totalorder %v1596_v53, %v668_v18 }
 0x414   : > { %v671_v19 = vsel %vm669_vm3, 1, %v1486_v12  ;;  %v672_v20 = vsel %vm670_vm4, 1, %v1486_v12 }
 0x415   : > { %v673_v21 = vadd.s32 %v672_v20, %v671_v19 }
 0x417   : > { %v675_v22 = vshrl.u32 %v673_v21, 16  ;;  %v674_v23 = vand.u32 65535, %v673_v21 }
 0x419   : > { %v677_v24 = vcvt.s32.f32 %v675_v22  ;;  %v676_v25 = vcvt.s32.f32 %v674_v23 }
 0x41b   : > { %680 = vadd.xlane.f32.xlu1 %v677_v24  ;;  %678 = vadd.xlane.f32.xlu2 %v676_v25 }
 0x48e   : > { %v681_v26 = vpop.xlane.xlu1 %680  ;;  %v679_v27 = vpop.xlane.xlu2 %678 }
 0x48f   : > { %v683_v28 = vcvt.f32.s32 %v681_v26  ;;  %v682_v30 = vcvt.f32.s32 %v679_v27 }
 0x491   : > { %v684_v29 = vshll.u32 %v683_v28, 16 }
 0x493   : > { %v685_v31 = vadd.s32 %v684_v29, %v682_v30 }
 0x495   : > { %vm686_vm5 = vcmp.ge.s32.totalorder %v685_v31, %v1605_v14 }
 0x496   : > { %v687_v32 = vsel %vm686_vm5, %v668_v18, %v664_v13  ;;  %v688_v33 = vsel %vm686_vm5, %v665_v15, %v668_v18 }
 0x497   : > { %v689_v34 = vsub.s32 %v688_v33, %v687_v32 }
 0x499   : > { %v690_v35 = vshra.s32 %v689_v34, 1 }
 0x49b   : > { %v691_v36 = vadd.s32 %v690_v35, %v687_v32 }
 0x49d   : > { %vm692_vm6 = vcmp.ge.s32.totalorder %v1591_v52, %v691_v36  ;;  %vm693_vm7 = vcmp.ge.s32.totalorder %v1596_v53, %v691_v36 }
 0x49e   : > { %v694_v37 = vsel %vm692_vm6, 1, %v1486_v12  ;;  %v695_v38 = vsel %vm693_vm7, 1, %v1486_v12 }
 0x49f   : > { %v696_v39 = vadd.s32 %v695_v38, %v694_v37 }
 0x4a1   : > { %v698_v40 = vshrl.u32 %v696_v39, 16  ;;  %v697_v41 = vand.u32 65535, %v696_v39 }
 0x4a3   : > { %v700_v42 = vcvt.s32.f32 %v698_v40  ;;  %v699_v43 = vcvt.s32.f32 %v697_v41 }
 0x4a5   : > { %703 = vadd.xlane.f32.xlu0 %v700_v42  ;;  %701 = vadd.xlane.f32.xlu1 %v699_v43 }
 0x518   : > { %v704_v44 = vpop.xlane.xlu0 %703  ;;  %v702_v45 = vpop.xlane.xlu1 %701 }
 0x519   : > { %v706_v46 = vcvt.f32.s32 %v704_v44  ;;  %v705_v48 = vcvt.f32.s32 %v702_v45 }
 0x51b   : > { %v707_v47 = vshll.u32 %v706_v46, 16 }
 0x51d   : > { %v708_v49 = vadd.s32 %v707_v47, %v705_v48 }
 0x51f   : > { %vm709_vm8 = vcmp.ge.s32.totalorder %v708_v49, %v1605_v14 }
 0x520   : > { %v710_v54 = vsel %vm709_vm8, %v691_v36, %v687_v32  ;;  %v711_v55 = vsel %vm709_vm8, %v688_v33, %v691_v36 }
 0x521   : > { %v712_v56 = vsub.s32 %v711_v55, %v710_v54 }
 0x523   : > { %v713_v57 = vshra.s32 %v712_v56, 1 }
 0x525   : > { %v714_v58 = vadd.s32 %v713_v57, %v710_v54 }
 0x527   : > { %vm715_vm9 = vcmp.ge.s32.totalorder %v1591_v52, %v714_v58  ;;  %vm716_vm10 = vcmp.ge.s32.totalorder %v1596_v53, %v714_v58 }
 0x528   : > { %v717_v59 = vsel %vm715_vm9, 1, %v1486_v12  ;;  %v718_v60 = vsel %vm716_vm10, 1, %v1486_v12 }
 0x529   : > { %v719_v61 = vadd.s32 %v718_v60, %v717_v59 }
 0x52b   : > { %v721_v62 = vshrl.u32 %v719_v61, 16  ;;  %v720_v63 = vand.u32 65535, %v719_v61 }
 0x52d   : > { %v723_v0 = vcvt.s32.f32 %v721_v62  ;;  %v722_v1 = vcvt.s32.f32 %v720_v63 }
 0x52f   : > { %726 = vadd.xlane.f32.xlu2 %v723_v0  ;;  %724 = vadd.xlane.f32.xlu0 %v722_v1 }
 0x5a2   : > { %v727_v3 = vpop.xlane.xlu2 %726  ;;  %v725_v4 = vpop.xlane.xlu0 %724 }
 0x5a3   : > { %v729_v5 = vcvt.f32.s32 %v727_v3  ;;  %v728_v7 = vcvt.f32.s32 %v725_v4 }
 0x5a5   : > { %v730_v6 = vshll.u32 %v729_v5, 16 }
 0x5a7   : > { %v731_v8 = vadd.s32 %v730_v6, %v728_v7 }
 0x5a9   : > { %vm732_vm11 = vcmp.ge.s32.totalorder %v731_v8, %v1605_v14 }
 0x5aa   : > { %v733_v11 = vsel %vm732_vm11, %v714_v58, %v710_v54  ;;  %v734_v13 = vsel %vm732_vm11, %v711_v55, %v714_v58 }
 0x5ab   : > { %v735_v15 = vsub.s32 %v734_v13, %v733_v11 }
 0x5ad   : > { %v736_v16 = vshra.s32 %v735_v15, 1 }
 0x5af   : > { %v737_v17 = vadd.s32 %v736_v16, %v733_v11 }
 0x5b1   : > { %vm738_vm12 = vcmp.ge.s32.totalorder %v1591_v52, %v737_v17  ;;  %vm739_vm13 = vcmp.ge.s32.totalorder %v1596_v53, %v737_v17 }
 0x5b2   : > { %v740_v18 = vsel %vm738_vm12, 1, %v1486_v12  ;;  %v741_v19 = vsel %vm739_vm13, 1, %v1486_v12 }
 0x5b3   : > { %v742_v20 = vadd.s32 %v741_v19, %v740_v18 }
 0x5b5   : > { %v744_v21 = vshrl.u32 %v742_v20, 16  ;;  %v743_v22 = vand.u32 65535, %v742_v20 }
 0x5b7   : > { %v746_v23 = vcvt.s32.f32 %v744_v21  ;;  %v745_v24 = vcvt.s32.f32 %v743_v22 }
 0x5b9   : > { %749 = vadd.xlane.f32.xlu1 %v746_v23  ;;  %747 = vadd.xlane.f32.xlu2 %v745_v24 }
 0x62c   : > { %v750_v25 = vpop.xlane.xlu1 %749  ;;  %v748_v26 = vpop.xlane.xlu2 %747 }
 0x62d   : > { %v752_v27 = vcvt.f32.s32 %v750_v25  ;;  %v751_v29 = vcvt.f32.s32 %v748_v26 }
 0x62f   : > { %v753_v28 = vshll.u32 %v752_v27, 16 }
 0x631   : > { %v754_v30 = vadd.s32 %v753_v28, %v751_v29 }
 0x633   : > { %vm755_vm14 = vcmp.ge.s32.totalorder %v754_v30, %v1605_v14 }
 0x634   : > { %v756_v31 = vsel %vm755_vm14, %v737_v17, %v733_v11  ;;  %v757_v32 = vsel %vm755_vm14, %v734_v13, %v737_v17 }
 0x635   : > { %v758_v33 = vsub.s32 %v757_v32, %v756_v31 }
 0x637   : > { %v759_v34 = vshra.s32 %v758_v33, 1 }
 0x639   : > { %v760_v35 = vadd.s32 %v759_v34, %v756_v31 }
 0x63b   : > { %vm761_vm15 = vcmp.ge.s32.totalorder %v1591_v52, %v760_v35  ;;  %vm762_vm2 = vcmp.ge.s32.totalorder %v1596_v53, %v760_v35 }
 0x63c   : > { %v763_v36 = vsel %vm761_vm15, 1, %v1486_v12  ;;  %v764_v37 = vsel %vm762_vm2, 1, %v1486_v12 }
 0x63d   : > { %v765_v38 = vadd.s32 %v764_v37, %v763_v36 }
 0x63f   : > { %v767_v39 = vshrl.u32 %v765_v38, 16  ;;  %v766_v40 = vand.u32 65535, %v765_v38 }
 0x641   : > { %v769_v41 = vcvt.s32.f32 %v767_v39  ;;  %v768_v42 = vcvt.s32.f32 %v766_v40 }
 0x643   : > { %772 = vadd.xlane.f32.xlu0 %v769_v41  ;;  %770 = vadd.xlane.f32.xlu1 %v768_v42 }
 0x6b6   : > { %v773_v43 = vpop.xlane.xlu0 %772  ;;  %v771_v44 = vpop.xlane.xlu1 %770 }
 0x6b7   : > { %v775_v45 = vcvt.f32.s32 %v773_v43  ;;  %v774_v47 = vcvt.f32.s32 %v771_v44 }
 0x6b9   : > { %v776_v46 = vshll.u32 %v775_v45, 16 }
 0x6bb   : > { %v777_v48 = vadd.s32 %v776_v46, %v774_v47 }
 0x6bd   : > { %vm778_vm3 = vcmp.ge.s32.totalorder %v777_v48, %v1605_v14 }
 0x6be   : > { %v779_v49 = vsel %vm778_vm3, %v760_v35, %v756_v31  ;;  %v780_v54 = vsel %vm778_vm3, %v757_v32, %v760_v35 }
 0x6bf   : > { %v781_v55 = vsub.s32 %v780_v54, %v779_v49 }
 0x6c1   : > { %v782_v56 = vshra.s32 %v781_v55, 1 }
 0x6c3   : > { %v783_v57 = vadd.s32 %v782_v56, %v779_v49 }
 0x6c5   : > { %vm784_vm4 = vcmp.ge.s32.totalorder %v1591_v52, %v783_v57  ;;  %vm785_vm5 = vcmp.ge.s32.totalorder %v1596_v53, %v783_v57 }
 0x6c6   : > { %v786_v58 = vsel %vm784_vm4, 1, %v1486_v12  ;;  %v787_v59 = vsel %vm785_vm5, 1, %v1486_v12 }
 0x6c7   : > { %v788_v60 = vadd.s32 %v787_v59, %v786_v58 }
 0x6c9   : > { %v790_v61 = vshrl.u32 %v788_v60, 16  ;;  %v789_v62 = vand.u32 65535, %v788_v60 }
 0x6cb   : > { %v792_v63 = vcvt.s32.f32 %v790_v61  ;;  %v791_v0 = vcvt.s32.f32 %v789_v62 }
 0x6cd   : > { %795 = vadd.xlane.f32.xlu2 %v792_v63  ;;  %793 = vadd.xlane.f32.xlu0 %v791_v0 }
 0x740   : > { %v796_v1 = vpop.xlane.xlu2 %795  ;;  %v794_v3 = vpop.xlane.xlu0 %793 }
 0x741   : > { %v798_v4 = vcvt.f32.s32 %v796_v1  ;;  %v797_v6 = vcvt.f32.s32 %v794_v3 }
 0x743   : > { %v799_v5 = vshll.u32 %v798_v4, 16 }
 0x745   : > { %v800_v7 = vadd.s32 %v799_v5, %v797_v6 }
 0x747   : > { %vm801_vm6 = vcmp.ge.s32.totalorder %v800_v7, %v1605_v14 }
 0x748   : > { %v802_v8 = vsel %vm801_vm6, %v783_v57, %v779_v49  ;;  %v803_v11 = vsel %vm801_vm6, %v780_v54, %v783_v57 }
 0x749   : > { %v804_v13 = vsub.s32 %v803_v11, %v802_v8 }
 0x74b   : > { %v805_v15 = vshra.s32 %v804_v13, 1 }
 0x74d   : > { %v806_v16 = vadd.s32 %v805_v15, %v802_v8 }
 0x74f   : > { %vm807_vm7 = vcmp.ge.s32.totalorder %v1591_v52, %v806_v16  ;;  %vm808_vm8 = vcmp.ge.s32.totalorder %v1596_v53, %v806_v16 }
 0x750   : > { %v809_v17 = vsel %vm807_vm7, 1, %v1486_v12  ;;  %v810_v18 = vsel %vm808_vm8, 1, %v1486_v12 }
 0x751   : > { %v811_v19 = vadd.s32 %v810_v18, %v809_v17 }
 0x753   : > { %v813_v20 = vshrl.u32 %v811_v19, 16  ;;  %v812_v21 = vand.u32 65535, %v811_v19 }
 0x755   : > { %v815_v22 = vcvt.s32.f32 %v813_v20  ;;  %v814_v23 = vcvt.s32.f32 %v812_v21 }
 0x757   : > { %818 = vadd.xlane.f32.xlu1 %v815_v22  ;;  %816 = vadd.xlane.f32.xlu2 %v814_v23 }
 0x7ca   : > { %v819_v24 = vpop.xlane.xlu1 %818  ;;  %v817_v25 = vpop.xlane.xlu2 %816 }
 0x7cb   : > { %v821_v26 = vcvt.f32.s32 %v819_v24  ;;  %v820_v28 = vcvt.f32.s32 %v817_v25 }
 0x7cd   : > { %v822_v27 = vshll.u32 %v821_v26, 16 }
 0x7cf   : > { %v823_v29 = vadd.s32 %v822_v27, %v820_v28 }
 0x7d1   : > { %vm824_vm9 = vcmp.ge.s32.totalorder %v823_v29, %v1605_v14 }
 0x7d2   : > { %v825_v30 = vsel %vm824_vm9, %v806_v16, %v802_v8  ;;  %v826_v31 = vsel %vm824_vm9, %v803_v11, %v806_v16 }
 0x7d3   : > { %v827_v32 = vsub.s32 %v826_v31, %v825_v30 }
 0x7d5   : > { %v828_v33 = vshra.s32 %v827_v32, 1 }
 0x7d7   : > { %v829_v34 = vadd.s32 %v828_v33, %v825_v30 }
 0x7d9   : > { %vm830_vm10 = vcmp.ge.s32.totalorder %v1591_v52, %v829_v34  ;;  %vm831_vm11 = vcmp.ge.s32.totalorder %v1596_v53, %v829_v34 }
 0x7da   : > { %v832_v35 = vsel %vm830_vm10, 1, %v1486_v12  ;;  %v833_v36 = vsel %vm831_vm11, 1, %v1486_v12 }
 0x7db   : > { %v834_v37 = vadd.s32 %v833_v36, %v832_v35 }
 0x7dd   : > { %v836_v38 = vshrl.u32 %v834_v37, 16  ;;  %v835_v39 = vand.u32 65535, %v834_v37 }
 0x7df   : > { %v838_v40 = vcvt.s32.f32 %v836_v38  ;;  %v837_v41 = vcvt.s32.f32 %v835_v39 }
 0x7e1   : > { %841 = vadd.xlane.f32.xlu0 %v838_v40  ;;  %839 = vadd.xlane.f32.xlu1 %v837_v41 }
 0x854   : > { %v842_v42 = vpop.xlane.xlu0 %841  ;;  %v840_v43 = vpop.xlane.xlu1 %839 }
 0x855   : > { %v844_v44 = vcvt.f32.s32 %v842_v42  ;;  %v843_v46 = vcvt.f32.s32 %v840_v43 }
 0x857   : > { %v845_v45 = vshll.u32 %v844_v44, 16 }
 0x859   : > { %v846_v47 = vadd.s32 %v845_v45, %v843_v46 }
 0x85b   : > { %vm847_vm12 = vcmp.ge.s32.totalorder %v846_v47, %v1605_v14 }
 0x85c   : > { %v848_v48 = vsel %vm847_vm12, %v829_v34, %v825_v30  ;;  %v849_v49 = vsel %vm847_vm12, %v826_v31, %v829_v34 }
 0x85d   : > { %v850_v54 = vsub.s32 %v849_v49, %v848_v48 }
 0x85f   : > { %v851_v55 = vshra.s32 %v850_v54, 1 }
 0x861   : > { %v852_v56 = vadd.s32 %v851_v55, %v848_v48 }
 0x863   : > { %vm853_vm13 = vcmp.ge.s32.totalorder %v1591_v52, %v852_v56  ;;  %vm854_vm14 = vcmp.ge.s32.totalorder %v1596_v53, %v852_v56 }
 0x864   : > { %v855_v57 = vsel %vm853_vm13, 1, %v1486_v12  ;;  %v856_v58 = vsel %vm854_vm14, 1, %v1486_v12 }
 0x865   : > { %v857_v59 = vadd.s32 %v856_v58, %v855_v57 }
 0x867   : > { %v859_v60 = vshrl.u32 %v857_v59, 16  ;;  %v858_v61 = vand.u32 65535, %v857_v59 }
 0x869   : > { %v861_v62 = vcvt.s32.f32 %v859_v60  ;;  %v860_v63 = vcvt.s32.f32 %v858_v61 }
 0x86b   : > { %864 = vadd.xlane.f32.xlu2 %v861_v62  ;;  %862 = vadd.xlane.f32.xlu0 %v860_v63 }
 0x8de   : > { %v865_v0 = vpop.xlane.xlu2 %864  ;;  %v863_v1 = vpop.xlane.xlu0 %862 }
 0x8df   : > { %v867_v3 = vcvt.f32.s32 %v865_v0  ;;  %v866_v5 = vcvt.f32.s32 %v863_v1 }
 0x8e1   : > { %v868_v4 = vshll.u32 %v867_v3, 16 }
 0x8e3   : > { %v869_v6 = vadd.s32 %v868_v4, %v866_v5 }
 0x8e5   : > { %vm870_vm15 = vcmp.ge.s32.totalorder %v869_v6, %v1605_v14 }
 0x8e6   : > { %v871_v7 = vsel %vm870_vm15, %v852_v56, %v848_v48  ;;  %v872_v8 = vsel %vm870_vm15, %v849_v49, %v852_v56 }
 0x8e7   : > { %v873_v11 = vsub.s32 %v872_v8, %v871_v7 }
 0x8e9   : > { %v874_v13 = vshra.s32 %v873_v11, 1 }
 0x8eb   : > { %v875_v15 = vadd.s32 %v874_v13, %v871_v7 }
 0x8ed   : > { %vm876_vm2 = vcmp.ge.s32.totalorder %v1591_v52, %v875_v15  ;;  %vm877_vm3 = vcmp.ge.s32.totalorder %v1596_v53, %v875_v15 }
 0x8ee   : > { %v878_v16 = vsel %vm876_vm2, 1, %v1486_v12  ;;  %v879_v17 = vsel %vm877_vm3, 1, %v1486_v12 }
 0x8ef   : > { %v880_v18 = vadd.s32 %v879_v17, %v878_v16 }
 0x8f1   : > { %v882_v19 = vshrl.u32 %v880_v18, 16  ;;  %v881_v20 = vand.u32 65535, %v880_v18 }
 0x8f3   : > { %v884_v21 = vcvt.s32.f32 %v882_v19  ;;  %v883_v22 = vcvt.s32.f32 %v881_v20 }
 0x8f5   : > { %887 = vadd.xlane.f32.xlu1 %v884_v21  ;;  %885 = vadd.xlane.f32.xlu2 %v883_v22 }
 0x968   : > { %v888_v23 = vpop.xlane.xlu1 %887  ;;  %v886_v24 = vpop.xlane.xlu2 %885 }
 0x969   : > { %v890_v25 = vcvt.f32.s32 %v888_v23  ;;  %v889_v27 = vcvt.f32.s32 %v886_v24 }
 0x96b   : > { %v891_v26 = vshll.u32 %v890_v25, 16 }
 0x96d   : > { %v892_v28 = vadd.s32 %v891_v26, %v889_v27 }
 0x96f   : > { %vm893_vm4 = vcmp.ge.s32.totalorder %v892_v28, %v1605_v14 }
 0x970   : > { %v894_v29 = vsel %vm893_vm4, %v875_v15, %v871_v7  ;;  %v895_v30 = vsel %vm893_vm4, %v872_v8, %v875_v15 }
 0x971   : > { %v896_v31 = vsub.s32 %v895_v30, %v894_v29 }
 0x973   : > { %v897_v32 = vshra.s32 %v896_v31, 1 }
 0x975   : > { %v898_v33 = vadd.s32 %v897_v32, %v894_v29 }
 0x977   : > { %vm899_vm5 = vcmp.ge.s32.totalorder %v1591_v52, %v898_v33  ;;  %vm900_vm6 = vcmp.ge.s32.totalorder %v1596_v53, %v898_v33 }
 0x978   : > { %v901_v34 = vsel %vm899_vm5, 1, %v1486_v12  ;;  %v902_v35 = vsel %vm900_vm6, 1, %v1486_v12 }
 0x979   : > { %v903_v36 = vadd.s32 %v902_v35, %v901_v34 }
 0x97b   : > { %v905_v37 = vshrl.u32 %v903_v36, 16  ;;  %v904_v38 = vand.u32 65535, %v903_v36 }
 0x97d   : > { %v907_v39 = vcvt.s32.f32 %v905_v37  ;;  %v906_v40 = vcvt.s32.f32 %v904_v38 }
 0x97f   : > { %910 = vadd.xlane.f32.xlu0 %v907_v39  ;;  %908 = vadd.xlane.f32.xlu1 %v906_v40 }
 0x9f2   : > { %v911_v41 = vpop.xlane.xlu0 %910  ;;  %v909_v42 = vpop.xlane.xlu1 %908 }
 0x9f3   : > { %v913_v43 = vcvt.f32.s32 %v911_v41  ;;  %v912_v45 = vcvt.f32.s32 %v909_v42 }
 0x9f5   : > { %v914_v44 = vshll.u32 %v913_v43, 16 }
 0x9f7   : > { %v915_v46 = vadd.s32 %v914_v44, %v912_v45 }
 0x9f9   : > { %vm916_vm7 = vcmp.ge.s32.totalorder %v915_v46, %v1605_v14 }
 0x9fa   : > { %v917_v47 = vsel %vm916_vm7, %v898_v33, %v894_v29  ;;  %v918_v48 = vsel %vm916_vm7, %v895_v30, %v898_v33 }
 0x9fb   : > { %v919_v49 = vsub.s32 %v918_v48, %v917_v47 }
 0x9fd   : > { %v920_v54 = vshra.s32 %v919_v49, 1 }
 0x9ff   : > { %v921_v55 = vadd.s32 %v920_v54, %v917_v47 }
 0xa01   : > { %vm922_vm8 = vcmp.ge.s32.totalorder %v1591_v52, %v921_v55  ;;  %vm923_vm9 = vcmp.ge.s32.totalorder %v1596_v53, %v921_v55 }
 0xa02   : > { %v924_v56 = vsel %vm922_vm8, 1, %v1486_v12  ;;  %v925_v57 = vsel %vm923_vm9, 1, %v1486_v12 }
 0xa03   : > { %v926_v58 = vadd.s32 %v925_v57, %v924_v56 }
 0xa05   : > { %v928_v59 = vshrl.u32 %v926_v58, 16  ;;  %v927_v60 = vand.u32 65535, %v926_v58 }
 0xa07   : > { %v930_v61 = vcvt.s32.f32 %v928_v59  ;;  %v929_v62 = vcvt.s32.f32 %v927_v60 }
 0xa09   : > { %933 = vadd.xlane.f32.xlu2 %v930_v61  ;;  %931 = vadd.xlane.f32.xlu0 %v929_v62 }
 0xa7c   : > { %v934_v63 = vpop.xlane.xlu2 %933  ;;  %v932_v0 = vpop.xlane.xlu0 %931 }
 0xa7d   : > { %v936_v1 = vcvt.f32.s32 %v934_v63  ;;  %v935_v4 = vcvt.f32.s32 %v932_v0 }
 0xa7f   : > { %v937_v3 = vshll.u32 %v936_v1, 16 }
 0xa81   : > { %v938_v5 = vadd.s32 %v937_v3, %v935_v4 }
 0xa83   : > { %vm939_vm10 = vcmp.ge.s32.totalorder %v938_v5, %v1605_v14 }
 0xa84   : > { %v940_v6 = vsel %vm939_vm10, %v921_v55, %v917_v47  ;;  %v941_v7 = vsel %vm939_vm10, %v918_v48, %v921_v55 }
 0xa85   : > { %v942_v8 = vsub.s32 %v941_v7, %v940_v6 }
 0xa87   : > { %v943_v11 = vshra.s32 %v942_v8, 1 }
 0xa89   : > { %v944_v13 = vadd.s32 %v943_v11, %v940_v6 }
 0xa8b   : > { %vm945_vm11 = vcmp.ge.s32.totalorder %v1591_v52, %v944_v13  ;;  %vm946_vm12 = vcmp.ge.s32.totalorder %v1596_v53, %v944_v13 }
 0xa8c   : > { %v947_v15 = vsel %vm945_vm11, 1, %v1486_v12  ;;  %v948_v16 = vsel %vm946_vm12, 1, %v1486_v12 }
 0xa8d   : > { %v949_v17 = vadd.s32 %v948_v16, %v947_v15 }
 0xa8f   : > { %v951_v18 = vshrl.u32 %v949_v17, 16  ;;  %v950_v19 = vand.u32 65535, %v949_v17 }
 0xa91   : > { %v953_v20 = vcvt.s32.f32 %v951_v18  ;;  %v952_v21 = vcvt.s32.f32 %v950_v19 }
 0xa93   : > { %956 = vadd.xlane.f32.xlu1 %v953_v20  ;;  %954 = vadd.xlane.f32.xlu2 %v952_v21 }
 0xb06   : > { %v957_v22 = vpop.xlane.xlu1 %956  ;;  %v955_v23 = vpop.xlane.xlu2 %954 }
 0xb07   : > { %v959_v24 = vcvt.f32.s32 %v957_v22  ;;  %v958_v26 = vcvt.f32.s32 %v955_v23 }
 0xb09   : > { %v960_v25 = vshll.u32 %v959_v24, 16 }
 0xb0b   : > { %v961_v27 = vadd.s32 %v960_v25, %v958_v26 }
 0xb0d   : > { %vm962_vm13 = vcmp.ge.s32.totalorder %v961_v27, %v1605_v14 }
 0xb0e   : > { %v963_v28 = vsel %vm962_vm13, %v944_v13, %v940_v6  ;;  %v964_v29 = vsel %vm962_vm13, %v941_v7, %v944_v13 }
 0xb0f   : > { %v965_v30 = vsub.s32 %v964_v29, %v963_v28 }
 0xb11   : > { %v966_v31 = vshra.s32 %v965_v30, 1 }
 0xb13   : > { %v967_v32 = vadd.s32 %v966_v31, %v963_v28 }
 0xb15   : > { %vm968_vm14 = vcmp.ge.s32.totalorder %v1591_v52, %v967_v32  ;;  %vm969_vm15 = vcmp.ge.s32.totalorder %v1596_v53, %v967_v32 }
 0xb16   : > { %v970_v33 = vsel %vm968_vm14, 1, %v1486_v12  ;;  %v971_v34 = vsel %vm969_vm15, 1, %v1486_v12 }
 0xb17   : > { %v972_v35 = vadd.s32 %v971_v34, %v970_v33 }
 0xb19   : > { %v974_v36 = vshrl.u32 %v972_v35, 16  ;;  %v973_v37 = vand.u32 65535, %v972_v35 }
 0xb1b   : > { %v976_v38 = vcvt.s32.f32 %v974_v36  ;;  %v975_v39 = vcvt.s32.f32 %v973_v37 }
 0xb1d   : > { %979 = vadd.xlane.f32.xlu0 %v976_v38  ;;  %977 = vadd.xlane.f32.xlu1 %v975_v39 }
 0xb90   : > { %v980_v40 = vpop.xlane.xlu0 %979  ;;  %v978_v41 = vpop.xlane.xlu1 %977 }
 0xb91   : > { %v982_v42 = vcvt.f32.s32 %v980_v40  ;;  %v981_v44 = vcvt.f32.s32 %v978_v41 }
 0xb93   : > { %v983_v43 = vshll.u32 %v982_v42, 16 }
 0xb95   : > { %v984_v45 = vadd.s32 %v983_v43, %v981_v44 }
 0xb97   : > { %vm985_vm2 = vcmp.ge.s32.totalorder %v984_v45, %v1605_v14 }
 0xb98   : > { %v986_v46 = vsel %vm985_vm2, %v967_v32, %v963_v28  ;;  %v987_v47 = vsel %vm985_vm2, %v964_v29, %v967_v32 }
 0xb99   : > { %v988_v48 = vsub.s32 %v987_v47, %v986_v46 }
 0xb9b   : > { %v989_v49 = vshra.s32 %v988_v48, 1 }
 0xb9d   : > { %v990_v54 = vadd.s32 %v989_v49, %v986_v46 }
 0xb9f   : > { %vm991_vm3 = vcmp.ge.s32.totalorder %v1591_v52, %v990_v54  ;;  %vm992_vm4 = vcmp.ge.s32.totalorder %v1596_v53, %v990_v54 }
 0xba0   : > { %v993_v55 = vsel %vm991_vm3, 1, %v1486_v12  ;;  %v994_v56 = vsel %vm992_vm4, 1, %v1486_v12 }
 0xba1   : > { %v995_v57 = vadd.s32 %v994_v56, %v993_v55 }
 0xba3   : > { %v997_v58 = vshrl.u32 %v995_v57, 16  ;;  %v996_v59 = vand.u32 65535, %v995_v57 }
 0xba5   : > { %v999_v60 = vcvt.s32.f32 %v997_v58  ;;  %v998_v61 = vcvt.s32.f32 %v996_v59 }
 0xba7   : > { %1002 = vadd.xlane.f32.xlu2 %v999_v60  ;;  %1000 = vadd.xlane.f32.xlu0 %v998_v61 }
 0xc1a   : > { %v1003_v62 = vpop.xlane.xlu2 %1002  ;;  %v1001_v63 = vpop.xlane.xlu0 %1000 }
 0xc1b   : > { %v1005_v0 = vcvt.f32.s32 %v1003_v62  ;;  %v1004_v3 = vcvt.f32.s32 %v1001_v63 }
 0xc1d   : > { %v1006_v1 = vshll.u32 %v1005_v0, 16 }
 0xc1f   : > { %v1007_v4 = vadd.s32 %v1006_v1, %v1004_v3 }
 0xc21   : > { %vm1008_vm5 = vcmp.ge.s32.totalorder %v1007_v4, %v1605_v14 }
 0xc22   : > { %v1009_v5 = vsel %vm1008_vm5, %v990_v54, %v986_v46  ;;  %v1010_v6 = vsel %vm1008_vm5, %v987_v47, %v990_v54 }
 0xc23   : > { %v1011_v7 = vsub.s32 %v1010_v6, %v1009_v5 }
 0xc25   : > { %v1012_v8 = vshra.s32 %v1011_v7, 1 }
 0xc27   : > { %v1013_v11 = vadd.s32 %v1012_v8, %v1009_v5 }
 0xc29   : > { %vm1014_vm6 = vcmp.ge.s32.totalorder %v1591_v52, %v1013_v11  ;;  %vm1015_vm7 = vcmp.ge.s32.totalorder %v1596_v53, %v1013_v11 }
 0xc2a   : > { %v1016_v13 = vsel %vm1014_vm6, 1, %v1486_v12  ;;  %v1017_v15 = vsel %vm1015_vm7, 1, %v1486_v12 }
 0xc2b   : > { %v1018_v16 = vadd.s32 %v1017_v15, %v1016_v13 }
 0xc2d   : > { %v1020_v17 = vshrl.u32 %v1018_v16, 16  ;;  %v1019_v18 = vand.u32 65535, %v1018_v16 }
 0xc2f   : > { %v1022_v19 = vcvt.s32.f32 %v1020_v17  ;;  %v1021_v20 = vcvt.s32.f32 %v1019_v18 }
 0xc31   : > { %1025 = vadd.xlane.f32.xlu1 %v1022_v19  ;;  %1023 = vadd.xlane.f32.xlu2 %v1021_v20 }
 0xca4   : > { %v1026_v21 = vpop.xlane.xlu1 %1025  ;;  %v1024_v22 = vpop.xlane.xlu2 %1023 }
 0xca5   : > { %v1028_v23 = vcvt.f32.s32 %v1026_v21  ;;  %v1027_v25 = vcvt.f32.s32 %v1024_v22 }
 0xca7   : > { %v1029_v24 = vshll.u32 %v1028_v23, 16 }
 0xca9   : > { %v1030_v26 = vadd.s32 %v1029_v24, %v1027_v25 }
 0xcab   : > { %vm1031_vm8 = vcmp.ge.s32.totalorder %v1030_v26, %v1605_v14 }
 0xcac   : > { %v1032_v27 = vsel %vm1031_vm8, %v1013_v11, %v1009_v5  ;;  %v1033_v28 = vsel %vm1031_vm8, %v1010_v6, %v1013_v11 }
 0xcad   : > { %v1034_v29 = vsub.s32 %v1033_v28, %v1032_v27 }
 0xcaf   : > { %v1035_v30 = vshra.s32 %v1034_v29, 1 }
 0xcb1   : > { %v1036_v31 = vadd.s32 %v1035_v30, %v1032_v27 }
 0xcb3   : > { %vm1037_vm9 = vcmp.ge.s32.totalorder %v1591_v52, %v1036_v31  ;;  %vm1038_vm10 = vcmp.ge.s32.totalorder %v1596_v53, %v1036_v31 }
 0xcb4   : > { %v1039_v32 = vsel %vm1037_vm9, 1, %v1486_v12  ;;  %v1040_v33 = vsel %vm1038_vm10, 1, %v1486_v12 }
 0xcb5   : > { %v1041_v34 = vadd.s32 %v1040_v33, %v1039_v32 }
 0xcb7   : > { %v1043_v35 = vshrl.u32 %v1041_v34, 16  ;;  %v1042_v36 = vand.u32 65535, %v1041_v34 }
 0xcb9   : > { %v1045_v37 = vcvt.s32.f32 %v1043_v35  ;;  %v1044_v38 = vcvt.s32.f32 %v1042_v36 }
 0xcbb   : > { %1048 = vadd.xlane.f32.xlu0 %v1045_v37  ;;  %1046 = vadd.xlane.f32.xlu1 %v1044_v38 }
 0xd2e   : > { %v1049_v39 = vpop.xlane.xlu0 %1048  ;;  %v1047_v40 = vpop.xlane.xlu1 %1046 }
 0xd2f   : > { %v1051_v41 = vcvt.f32.s32 %v1049_v39  ;;  %v1050_v43 = vcvt.f32.s32 %v1047_v40 }
 0xd31   : > { %v1052_v42 = vshll.u32 %v1051_v41, 16 }
 0xd33   : > { %v1053_v44 = vadd.s32 %v1052_v42, %v1050_v43 }
 0xd35   : > { %vm1054_vm11 = vcmp.ge.s32.totalorder %v1053_v44, %v1605_v14 }
 0xd36   : > { %v1055_v45 = vsel %vm1054_vm11, %v1036_v31, %v1032_v27  ;;  %v1056_v46 = vsel %vm1054_vm11, %v1033_v28, %v1036_v31 }
 0xd37   : > { %v1057_v47 = vsub.s32 %v1056_v46, %v1055_v45 }
 0xd39   : > { %v1058_v48 = vshra.s32 %v1057_v47, 1 }
 0xd3b   : > { %v1059_v49 = vadd.s32 %v1058_v48, %v1055_v45 }
 0xd3d   : > { %vm1060_vm12 = vcmp.ge.s32.totalorder %v1591_v52, %v1059_v49  ;;  %vm1061_vm13 = vcmp.ge.s32.totalorder %v1596_v53, %v1059_v49 }
 0xd3e   : > { %v1062_v54 = vsel %vm1060_vm12, 1, %v1486_v12  ;;  %v1063_v55 = vsel %vm1061_vm13, 1, %v1486_v12 }
 0xd3f   : > { %v1064_v56 = vadd.s32 %v1063_v55, %v1062_v54 }
 0xd41   : > { %v1066_v57 = vshrl.u32 %v1064_v56, 16  ;;  %v1065_v58 = vand.u32 65535, %v1064_v56 }
 0xd43   : > { %v1068_v59 = vcvt.s32.f32 %v1066_v57  ;;  %v1067_v60 = vcvt.s32.f32 %v1065_v58 }
 0xd45   : > { %1071 = vadd.xlane.f32.xlu2 %v1068_v59  ;;  %1069 = vadd.xlane.f32.xlu0 %v1067_v60 }
 0xdb8   : > { %v1072_v61 = vpop.xlane.xlu2 %1071  ;;  %v1070_v62 = vpop.xlane.xlu0 %1069 }
 0xdb9   : > { %v1074_v63 = vcvt.f32.s32 %v1072_v61  ;;  %v1073_v1 = vcvt.f32.s32 %v1070_v62 }
 0xdbb   : > { %v1075_v0 = vshll.u32 %v1074_v63, 16 }
 0xdbd   : > { %v1076_v3 = vadd.s32 %v1075_v0, %v1073_v1 }
 0xdbf   : > { %vm1077_vm14 = vcmp.ge.s32.totalorder %v1076_v3, %v1605_v14 }
 0xdc0   : > { %v1078_v4 = vsel %vm1077_vm14, %v1059_v49, %v1055_v45  ;;  %v1079_v5 = vsel %vm1077_vm14, %v1056_v46, %v1059_v49 }
 0xdc1   : > { %v1080_v6 = vsub.s32 %v1079_v5, %v1078_v4 }
 0xdc3   : > { %v1081_v7 = vshra.s32 %v1080_v6, 1 }
 0xdc5   : > { %v1082_v8 = vadd.s32 %v1081_v7, %v1078_v4 }
 0xdc7   : > { %vm1083_vm15 = vcmp.ge.s32.totalorder %v1591_v52, %v1082_v8  ;;  %vm1084_vm2 = vcmp.ge.s32.totalorder %v1596_v53, %v1082_v8 }
 0xdc8   : > { %v1085_v11 = vsel %vm1083_vm15, 1, %v1486_v12  ;;  %v1086_v13 = vsel %vm1084_vm2, 1, %v1486_v12 }
 0xdc9   : > { %v1087_v15 = vadd.s32 %v1086_v13, %v1085_v11 }
 0xdcb   : > { %v1089_v16 = vshrl.u32 %v1087_v15, 16  ;;  %v1088_v17 = vand.u32 65535, %v1087_v15 }
 0xdcd   : > { %v1091_v18 = vcvt.s32.f32 %v1089_v16  ;;  %v1090_v19 = vcvt.s32.f32 %v1088_v17 }
 0xdcf   : > { %1094 = vadd.xlane.f32.xlu1 %v1091_v18  ;;  %1092 = vadd.xlane.f32.xlu2 %v1090_v19 }
 0xe42   : > { %v1095_v20 = vpop.xlane.xlu1 %1094  ;;  %v1093_v21 = vpop.xlane.xlu2 %1092 }
 0xe43   : > { %v1097_v22 = vcvt.f32.s32 %v1095_v20  ;;  %v1096_v24 = vcvt.f32.s32 %v1093_v21 }
 0xe45   : > { %v1098_v23 = vshll.u32 %v1097_v22, 16 }
 0xe47   : > { %v1099_v25 = vadd.s32 %v1098_v23, %v1096_v24 }
 0xe49   : > { %vm1100_vm3 = vcmp.ge.s32.totalorder %v1099_v25, %v1605_v14 }
 0xe4a   : > { %v1101_v26 = vsel %vm1100_vm3, %v1082_v8, %v1078_v4  ;;  %v1102_v27 = vsel %vm1100_vm3, %v1079_v5, %v1082_v8 }
 0xe4b   : > { %v1103_v28 = vsub.s32 %v1102_v27, %v1101_v26 }
 0xe4d   : > { %v1104_v29 = vshra.s32 %v1103_v28, 1 }
 0xe4f   : > { %v1105_v30 = vadd.s32 %v1104_v29, %v1101_v26 }
 0xe51   : > { %vm1106_vm4 = vcmp.ge.s32.totalorder %v1591_v52, %v1105_v30  ;;  %vm1107_vm5 = vcmp.ge.s32.totalorder %v1596_v53, %v1105_v30 }
 0xe52   : > { %v1108_v31 = vsel %vm1106_vm4, 1, %v1486_v12  ;;  %v1109_v32 = vsel %vm1107_vm5, 1, %v1486_v12 }
 0xe53   : > { %v1110_v33 = vadd.s32 %v1109_v32, %v1108_v31 }
 0xe55   : > { %v1112_v34 = vshrl.u32 %v1110_v33, 16  ;;  %v1111_v35 = vand.u32 65535, %v1110_v33 }
 0xe57   : > { %v1114_v36 = vcvt.s32.f32 %v1112_v34  ;;  %v1113_v37 = vcvt.s32.f32 %v1111_v35 }
 0xe59   : > { %1117 = vadd.xlane.f32.xlu0 %v1114_v36  ;;  %1115 = vadd.xlane.f32.xlu1 %v1113_v37 }
 0xecc   : > { %v1118_v38 = vpop.xlane.xlu0 %1117  ;;  %v1116_v39 = vpop.xlane.xlu1 %1115 }
 0xecd   : > { %v1120_v40 = vcvt.f32.s32 %v1118_v38  ;;  %v1119_v42 = vcvt.f32.s32 %v1116_v39 }
 0xecf   : > { %v1121_v41 = vshll.u32 %v1120_v40, 16 }
 0xed1   : > { %v1122_v43 = vadd.s32 %v1121_v41, %v1119_v42 }
 0xed3   : > { %vm1123_vm6 = vcmp.ge.s32.totalorder %v1122_v43, %v1605_v14 }
 0xed4   : > { %v1124_v44 = vsel %vm1123_vm6, %v1105_v30, %v1101_v26  ;;  %v1125_v45 = vsel %vm1123_vm6, %v1102_v27, %v1105_v30 }
 0xed5   : > { %v1126_v46 = vsub.s32 %v1125_v45, %v1124_v44 }
 0xed7   : > { %v1127_v47 = vshra.s32 %v1126_v46, 1 }
 0xed9   : > { %v1128_v48 = vadd.s32 %v1127_v47, %v1124_v44 }
 0xedb   : > { %vm1129_vm7 = vcmp.ge.s32.totalorder %v1591_v52, %v1128_v48  ;;  %vm1130_vm8 = vcmp.ge.s32.totalorder %v1596_v53, %v1128_v48 }
 0xedc   : > { %v1131_v49 = vsel %vm1129_vm7, 1, %v1486_v12  ;;  %v1132_v54 = vsel %vm1130_vm8, 1, %v1486_v12 }
 0xedd   : > { %v1133_v55 = vadd.s32 %v1132_v54, %v1131_v49 }
 0xedf   : > { %v1135_v56 = vshrl.u32 %v1133_v55, 16  ;;  %v1134_v57 = vand.u32 65535, %v1133_v55 }
 0xee1   : > { %v1137_v58 = vcvt.s32.f32 %v1135_v56  ;;  %v1136_v59 = vcvt.s32.f32 %v1134_v57 }
 0xee3   : > { %1140 = vadd.xlane.f32.xlu2 %v1137_v58  ;;  %1138 = vadd.xlane.f32.xlu0 %v1136_v59 }
 0xf56   : > { %v1141_v60 = vpop.xlane.xlu2 %1140  ;;  %v1139_v61 = vpop.xlane.xlu0 %1138 }
 0xf57   : > { %v1143_v62 = vcvt.f32.s32 %v1141_v60  ;;  %v1142_v0 = vcvt.f32.s32 %v1139_v61 }
 0xf59   : > { %v1144_v63 = vshll.u32 %v1143_v62, 16 }
 0xf5b   : > { %v1145_v1 = vadd.s32 %v1144_v63, %v1142_v0 }
 0xf5d   : > { %vm1146_vm9 = vcmp.ge.s32.totalorder %v1145_v1, %v1605_v14 }
 0xf5e   : > { %v1147_v3 = vsel %vm1146_vm9, %v1128_v48, %v1124_v44  ;;  %v1148_v4 = vsel %vm1146_vm9, %v1125_v45, %v1128_v48 }
 0xf5f   : > { %v1149_v5 = vsub.s32 %v1148_v4, %v1147_v3 }
 0xf61   : > { %v1150_v6 = vshra.s32 %v1149_v5, 1 }
 0xf63   : > { %v1151_v7 = vadd.s32 %v1150_v6, %v1147_v3 }
 0xf65   : > { %vm1152_vm10 = vcmp.ge.s32.totalorder %v1591_v52, %v1151_v7  ;;  %vm1153_vm11 = vcmp.ge.s32.totalorder %v1596_v53, %v1151_v7 }
 0xf66   : > { %v1154_v8 = vsel %vm1152_vm10, 1, %v1486_v12  ;;  %v1155_v11 = vsel %vm1153_vm11, 1, %v1486_v12 }
 0xf67   : > { %v1156_v13 = vadd.s32 %v1155_v11, %v1154_v8 }
 0xf69   : > { %v1158_v15 = vshrl.u32 %v1156_v13, 16  ;;  %v1157_v16 = vand.u32 65535, %v1156_v13 }
 0xf6b   : > { %v1160_v17 = vcvt.s32.f32 %v1158_v15  ;;  %v1159_v18 = vcvt.s32.f32 %v1157_v16 }
 0xf6d   : > { %1163 = vadd.xlane.f32.xlu1 %v1160_v17  ;;  %1161 = vadd.xlane.f32.xlu2 %v1159_v18  ;;  %v351_v18 = vld [vmem:[%s1778_s18] sm:$0xff] }
 0xfe0   : > { %v1164_v19 = vpop.xlane.xlu1 %1163  ;;  %v1162_v20 = vpop.xlane.xlu2 %1161 }
 0xfe1   : > { %v1166_v21 = vcvt.f32.s32 %v1164_v19  ;;  %v1165_v23 = vcvt.f32.s32 %v1162_v20  ;;  %v352_v19 = vld [vmem:[%s1778_s18 + $0x8] sm:$0xff]  ;;  %v359_v20 = vld [vmem:[%s1784_s24] sm:$0xff] }
 0xfe3   : > { %v1167_v22 = vshll.u32 %v1166_v21, 16  ;;  %v360_v21 = vld [vmem:[%s1784_s24 + $0x8] sm:$0xff] }
 0xfe5   : > { %v1168_v24 = vadd.s32 %v1167_v22, %v1165_v23  ;;  %v353_v22 = vld [vmem:[%s1778_s18 + $0x10] sm:$0xff] }
 0xfe6   : > { %v361_v23 = vld [vmem:[%s1784_s24 + $0x10] sm:$0xff] }
 0xfe7   : > { %vm1169_vm12 = vcmp.ge.s32.totalorder %v1168_v24, %v1605_v14  ;;  %v367_v24 = vsub.f32 %v351_v18, %v359_v20 }
 0xfe8   : > { %v1170_v25 = vsel %vm1169_vm12, %v1151_v7, %v1147_v3  ;;  %v1171_v26 = vsel %vm1169_vm12, %v1148_v4, %v1151_v7 }
 0xfe9   : > { %v1172_v27 = vsub.s32 %v1171_v26, %v1170_v25 }
 0xfeb   : > { %v1173_v28 = vshra.s32 %v1172_v27, 1  ;;  %v354_v27 = vld [vmem:[%s1778_s18 + $0x18] sm:$0xff] }
 0xfed   : > { %v1174_v29 = vadd.s32 %v1173_v28, %v1170_v25  ;;  %v362_v28 = vld [vmem:[%s1784_s24 + $0x18] sm:$0xff] }
 0xfef   : > { %vm1175_vm13 = vcmp.ge.s32.totalorder %v1591_v52, %v1174_v29  ;;  %vm1176_vm14 = vcmp.ge.s32.totalorder %v1596_v53, %v1174_v29 }
 0xff0   : > { %v1177_v30 = vsel %vm1175_vm13, 1, %v1486_v12  ;;  %v1178_v31 = vsel %vm1176_vm14, 1, %v1486_v12 }
 0xff1   : > { %v1179_v32 = vadd.s32 %v1178_v31, %v1177_v30  ;;  %v370_v31 = vsub.f32 %v354_v27, %v362_v28 }
 0xff3   : > { %v1181_v33 = vshrl.u32 %v1179_v32, 16  ;;  %v1180_v34 = vand.u32 65535, %v1179_v32 }
 0xff5   : > { %v1183_v35 = vcvt.s32.f32 %v1181_v33  ;;  %v1182_v36 = vcvt.s32.f32 %v1180_v34  ;;  %v355_v33 = vld [vmem:[%s1778_s18 + $0x20] sm:$0xff] }
 0xff6   : > { %v363_v34 = vld [vmem:[%s1784_s24 + $0x20] sm:$0xff] }
 0xff7   : > { %1186 = vadd.xlane.f32.xlu0 %v1183_v35  ;;  %1184 = vadd.xlane.f32.xlu1 %v1182_v36 }
0x106a   : > { %v1187_v37 = vpop.xlane.xlu0 %1186  ;;  %v1185_v38 = vpop.xlane.xlu1 %1184 }
0x106b   : > { %v1189_v39 = vcvt.f32.s32 %v1187_v37  ;;  %v1188_v41 = vcvt.f32.s32 %v1185_v38  ;;  %v356_v37 = vld [vmem:[%s1778_s18 + $0x28] sm:$0xff] }
0x106c   : > { %v364_v38 = vld [vmem:[%s1784_s24 + $0x28] sm:$0xff] }
0x106d   : > { %v1190_v40 = vshll.u32 %v1189_v39, 16  ;;  %v371_v39 = vsub.f32 %v355_v33, %v363_v34  ;;  %v427_v34 = vld [vmem:[%s1802_s28 + $0x20] sm:$0xff] }
0x106f   : > { %v1191_v42 = vadd.s32 %v1190_v40, %v1188_v41  ;;  %v378_v40 = vand.u32 2147483647, %v370_v31 }
0x1071   : > { %vm1192_vm15 = vcmp.ge.s32.totalorder %v1191_v42, %v1605_v14  ;;  %vm386_vm10 = vcmp.lt.f32.partialorder %v378_v40, 1.0 }
0x1072   : > { %v1193_v43 = vsel %vm1192_vm15, %v1174_v29, %v1170_v25  ;;  %v1194_v44 = vsel %vm1192_vm15, %v1171_v26, %v1174_v29  ;;  %v368_v25 = vsub.f32 %v352_v19, %v360_v21  ;;  %v369_v26 = vsub.f32 %v353_v22, %v361_v23  ;;  %v426_v23 = vld [vmem:[%s1802_s28 + $0x18] sm:$0xff] }
0x1073   : > { %v1195_v45 = vsub.s32 %v1194_v44, %v1193_v43  ;;  %v375_v29 = vand.u32 2147483647, %v367_v24 }
0x1074   : > { %v376_v30 = vand.u32 2147483647, %v368_v25  ;;  %v377_v32 = vand.u32 2147483647, %v369_v26 }
0x1075   : > { %v1196_v46 = vshra.s32 %v1195_v45, 1  ;;  %v391_v35 = vmul.f32 0.5, %v375_v29  ;;  %vm383_vm7 = vcmp.lt.f32.partialorder %v375_v29, 1.0 }
0x1076   : > { %v392_v36 = vmul.f32 0.5, %v376_v30  ;;  %v393_v41 = vmul.f32 0.5, %v377_v32  ;;  %v1407_v45 = vadd.f32 -0.5, %v376_v30  ;;  %vm384_vm8 = vcmp.lt.f32.partialorder %v376_v30, 1.0 }
0x1077   : > { %v1197_v47 = vadd.s32 %v1196_v46, %v1193_v43  ;;  %v399_v42 = vmul.f32 %v391_v35, %v375_v29  ;;  %v372_v46 = vsub.f32 %v356_v37, %v364_v38  ;;  %vm385_vm9 = vcmp.lt.f32.partialorder %v377_v32, 1.0 }
0x1079   : > { %vm1198_vm2 = vcmp.ge.s32.totalorder %v1591_v52, %v1197_v47  ;;  %vm1199_vm3 = vcmp.ge.s32.totalorder %v1596_v53, %v1197_v47 }
0x107a   : > { %v1200_v48 = vsel %vm1198_vm2, 1, %v1486_v12  ;;  %v1201_v49 = vsel %vm1199_vm3, 1, %v1486_v12  ;;  %vm1273_vm3 = vcmask 15360  }
0x107b   : > { %v1202_v54 = vadd.s32 %v1201_v49, %v1200_v48  ;;  %v365_v48 = vld [vmem:[%s1784_s24 + $0x30] sm:$0xff]  ;;  %v379_v49 = vand.u32 2147483647, %v371_v39 }
0x107d   : > { %v1204_v55 = vshrl.u32 %v1202_v54, 16  ;;  %v1203_v56 = vand.u32 65535, %v1202_v54  ;;  %v394_v54 = vmul.f32 0.5, %v378_v40  ;;  %v1410_v21 = vadd.f32 -0.5, %v379_v49 }
0x107e   : > { %vm387_vm11 = vcmp.lt.f32.partialorder %v379_v49, 1.0 }
0x107f   : > { %v1206_v57 = vcvt.s32.f32 %v1204_v55  ;;  %v1205_v58 = vcvt.s32.f32 %v1203_v56  ;;  %v401_v55 = vmul.f32 %v393_v41, %v377_v32  ;;  %v1408_v56 = vadd.f32 -0.5, %v377_v32 }
0x1081   : > { %1209 = vadd.xlane.f32.xlu2 %v1206_v57  ;;  %1207 = vadd.xlane.f32.xlu0 %v1205_v58 }
0x10f4   : > { %v1210_v59 = vpop.xlane.xlu2 %1209  ;;  %v1208_v60 = vpop.xlane.xlu0 %1207 }
0x10f5   : > { %v1212_v61 = vcvt.f32.s32 %v1210_v59  ;;  %v1211_v63 = vcvt.f32.s32 %v1208_v60  ;;  %v423_v59 = vld [vmem:[%s1802_s28] sm:$0xff]  ;;  %v424_v60 = vld [vmem:[%s1802_s28 + $0x8] sm:$0xff] }
0x10f7   : > { %v1213_v62 = vshll.u32 %v1212_v61, 16  ;;  %v358_v61 = vld [vmem:[%s1778_s18 + $0x38] sm:$0xff] }
0x10f9   : > { %v1214_v0 = vadd.s32 %v1213_v62, %v1211_v63  ;;  %v366_v62 = vld [vmem:[%s1784_s24 + $0x38] sm:$0xff] }
0x10fb   : > { %vm1215_vm4 = vcmp.ge.s32.totalorder %v1214_v0, %v1605_v14  ;;  %v380_v0 = vand.u32 2147483647, %v372_v46 }
0x10fc   : > { %v1759_v1 = vsel %vm1215_vm4, %v1197_v47, %v1193_v43  ;;  %v1217_v3 = vsel %vm1215_vm4, %v1194_v44, %v1197_v47  ;;  %v400_v43 = vmul.f32 %v392_v36, %v376_v30  ;;  %v1406_v44 = vadd.f32 -0.5, %v375_v29  ;;  %v357_v47 = vld [vmem:[%s1778_s18 + $0x30] sm:$0xff] }
0x10fd   : > { %v1218_v4 = vsub.s32 %v1217_v3, %v1759_v1  ;;  %v373_v63 = vsub.f32 %v357_v47, %v365_v48  ;;  %v1411_v29 = vadd.f32 -0.5, %v380_v0  ;;  %vm388_vm12 = vcmp.lt.f32.partialorder %v380_v0, 1.0 }
0x10fe   : > { %v415_v57 = vsel %vm383_vm7, %v399_v42, %v1406_v44  ;;  %v416_v58 = vsel %vm384_vm8, %v400_v43, %v1407_v45  ;;  %v428_v42 = vld [vmem:[%s1802_s28 + $0x28] sm:$0xff]  ;;  %vm1275_vm4 = vcmask 23552  }
0x10ff   : > { %v1219_v5 = vshra.s32 %v1218_v4, 1  ;;  %v431_v3 = vmul.f32 %v423_v59, %v415_v57  ;;  %v432_v4 = vmul.f32 %v424_v60, %v416_v58 }
0x1101   : > { %v1763_v6 = vadd.s32 %v1219_v5, %v1759_v1  ;;  %v395_v5 = vmul.f32 0.5, %v379_v49  ;;  %v439_v19 = vadd.f32 %v432_v4, %v431_v3 }
0x1103   : > { %vm1221_vm5 = vcmp.ge.s32.totalorder %v1591_v52, %v1763_v6  ;;  %vm1222_vm6 = vcmp.ge.s32.totalorder %v1596_v53, %v1763_v6  ;;  %v403_v20 = vmul.f32 %v395_v5, %v379_v49 }
0x1104   : > { %v1223_v7 = vsel %vm1221_vm5, 1, %v1486_v12  ;;  %v1224_v8 = vsel %vm1222_vm6, 1, %v1486_v12  ;;  %vm1277_vm5 = vcmask 31744  }
0x1105   : > { %v1225_v11 = vadd.s32 %v1224_v8, %v1223_v7  ;;  %v402_v7 = vmul.f32 %v394_v54, %v378_v40  ;;  %v1409_v8 = vadd.f32 -0.5, %v378_v40  ;;  %v419_v33 = vsel %vm387_vm11, %v403_v20, %v1410_v21 }
0x1106   : > { %v435_v43 = vmul.f32 %v427_v34, %v419_v33  ;;  %v1488_v54 = vmov 0.0  }
0x1107   : > { %v1227_v13 = vshrl.u32 %v1225_v11, 16  ;;  %v1226_v15 = vand.u32 65535, %v1225_v11  ;;  %v417_v11 = vsel %vm385_vm9, %v401_v55, %v1408_v56  ;;  %v418_v22 = vsel %vm386_vm10, %v402_v7, %v1409_v8  ;;  %v429_v56 = vld [vmem:[%s1802_s28 + $0x30] sm:$0xff]  ;;  %v430_v7 = vld [vmem:[%s1802_s28 + $0x38] sm:$0xff] }
0x1108   : > { %v434_v31 = vmul.f32 %v426_v23, %v418_v22  ;;  %v1404_v55 = vsel %vm331_vm0, 1.0, %v1488_v54  ;;  %v1405_v58 = vsel %vm332_vm1, 1.0, %v1488_v54  ;;  %vm1271_vm1 = vcmask 7168  }
0x1109   : > { %v1229_v16 = vcvt.s32.f32 %v1227_v13  ;;  %v1228_v17 = vcvt.s32.f32 %v1226_v15  ;;  %v425_v13 = vld [vmem:[%s1802_s28 + $0x10] sm:$0xff]  ;;  %v374_v15 = vsub.f32 %v358_v61, %v366_v62  ;;  %v493_v62 = vmul.f32 %v1404_v55, %v1584_v50 }
0x110a   : > { %v433_v18 = vmul.f32 %v425_v13, %v417_v11  ;;  %v494_v4 = vmul.f32 %v1405_v58, %v1586_v51 }
0x110b   : > { %1232 = vadd.xlane.f32.xlu1 %v1229_v16  ;;  %1230 = vadd.xlane.f32.xlu2 %v1228_v17  ;;  %v381_v16 = vand.u32 2147483647, %v373_v63  ;;  %v396_v17 = vmul.f32 0.5, %v380_v0  ;;  %v382_v24 = vand.u32 2147483647, %v374_v15 }
0x110c   : > { %v440_v32 = vadd.f32 %v439_v19, %v433_v18  ;;  %v495_v15 = vadd.f32 %v494_v4, %v493_v62 }
0x110d   : > { %v397_v27 = vmul.f32 0.5, %v381_v16  ;;  %v404_v28 = vmul.f32 %v396_v17, %v380_v0  ;;  %v398_v37 = vmul.f32 0.5, %v382_v24  ;;  %vm389_vm13 = vcmp.lt.f32.partialorder %v381_v16, 1.0 }
0x110e   : > { %v1412_v39 = vadd.f32 -0.5, %v381_v16  ;;  %v441_v44 = vadd.f32 %v440_v32, %v434_v31  ;;  %v1413_v46 = vadd.f32 -0.5, %v382_v24  ;;  %vm390_vm0 = vcmp.lt.f32.partialorder %v382_v24, 1.0 }
0x110f   : > { %v405_v38 = vmul.f32 %v397_v27, %v381_v16  ;;  %v420_v40 = vsel %vm388_vm12, %v404_v28, %v1411_v29  ;;  %v406_v45 = vmul.f32 %v398_v37, %v382_v24 }
0x1110   : > { %v436_v49 = vmul.f32 %v428_v42, %v420_v40  ;;  %v442_v57 = vadd.f32 %v441_v44, %v435_v43 }
0x1111   : > { %v421_v48 = vsel %vm389_vm13, %v405_v38, %v1412_v39  ;;  %v422_v5 = vsel %vm390_vm0, %v406_v45, %v1413_v46 }
0x1112   : > { %v437_v61 = vmul.f32 %v429_v56, %v421_v48  ;;  %v443_v3 = vadd.f32 %v442_v57, %v436_v49  ;;  %v438_v13 = vmul.f32 %v430_v7, %v422_v5 }
0x117e   : > { %v1233_v25 = vpop.xlane.xlu1 %1232  ;;  %v1231_v26 = vpop.xlane.xlu2 %1230 }
0x117f   : > { %v1235_v30 = vcvt.f32.s32 %v1233_v25  ;;  %v1234_v36 = vcvt.f32.s32 %v1231_v26 }
0x1181   : > { %v1236_v35 = vshll.u32 %v1235_v30, 16 }
0x1183   : > { %v1237_v41 = vadd.s32 %v1236_v35, %v1234_v36 }
0x1185   : > { %vm1238_vm14 = vcmp.ge.s32.totalorder %v1237_v41, %v1605_v14 }
0x1186   : > { %v1239_v47 = vsel %vm1238_vm14, %v1763_v6, %v1759_v1 }
0x1187   : > { %vm1240_vm15 = vcmp.gt.s32.totalorder %v1591_v52, %v1239_v47  ;;  %vm1241_vm2 = vcmp.gt.s32.totalorder %v1596_v53, %v1239_v47 }
0x1188   : > { %v1242_v1 = vsel %vm1240_vm15, 0.0, %v1591_v52  ;;  %v1243_v6 = vsel %vm1241_vm2, 0.0, %v1596_v53  ;;  %v1247_v9 = vsel %vm1240_vm15, 1, %v1486_v12  ;;  %v1248_v59 = vsel %vm1241_vm2, 1, %v1486_v12 }
0x1189   : > { %v1244_v60 = vmax.f32 %v1242_v1, %v1243_v6  ;;  %v1249_v10 = vadd.s32 %v1248_v59, %v1247_v9  ;;  %v444_v12 = vadd.f32 %v443_v3, %v437_v61  ;;  %v1263_v16 = vsel %vm1240_vm15, %v1591_v52, 0.0 }
0x118a   : > { %v1264_v50 = vsel %vm1241_vm2, %v1596_v53, 0.0  ;;  %v507_v52 = vcvt.s32.f32 %v1605_v14  ;;  %v350_v53 = vcvt.s32.f32 %v1602_v2 }
0x118b   : > { %1245 = vmax.xlane.f32.xlu2 %v1244_v60  ;;  %v1251_v63 = vshrl.u32 %v1249_v10, 16  ;;  %v1250_v0 = vand.u32 65535, %v1249_v10  ;;  %v445_v17 = vadd.f32 %v444_v12, %v438_v13  ;;  %v1265_v51 = vadd.f32 %v1264_v50, %v1263_v16 }
0x118d   : > { %v1253_v8 = vcvt.s32.f32 %v1251_v63  ;;  %v1252_v11 = vcvt.s32.f32 %v1250_v0 }
0x118f   : > { %1256 = vadd.xlane.f32.xlu0 %v1253_v8  ;;  %1254 = vadd.xlane.f32.xlu1 %v1252_v11 }
0x1193   : > { %496 = vadd.xlane.f32.xlu2 %v495_v15 }
0x1197   : > { %446 = vadd.xlane.f32.xlu0 %v445_v17  ;;  %1266 = vadd.xlane.f32.xlu1 %v1265_v51 }
0x11fe   : > { %v1246_v21 = vpop.xlane.xlu2 %1245 }
0x1202   : > { %v1257_v18 = vpop.xlane.xlu0 %1256  ;;  %v1255_v19 = vpop.xlane.xlu1 %1254 }
0x1203   : > { %v1259_v20 = vcvt.f32.s32 %v1257_v18  ;;  %v1258_v23 = vcvt.f32.s32 %v1255_v19 }
0x1205   : > { %v1260_v22 = vshll.u32 %v1259_v20, 16 }
0x1206   : > { %v497_v30 = vpop.xlane.xlu2 %496 }
0x1207   : > { %v1261_v24 = vadd.s32 %v1260_v22, %v1258_v23 }
0x1209   : > { %v1262_v25 = vcvt.s32.f32 %v1261_v24 }
0x120a   : > { %v447_v26 = vpop.xlane.xlu0 %446  ;;  %v1267_v31 = vpop.xlane.xlu1 %1266 }
0x120b   : > { %v1268_v27 = vsub.f32 %v507_v52, %v1262_v25  ;;  %v1272_v28 = vsel %vm1271_vm1, %v350_v53, %v447_v26 }
0x120c   : > { %v1274_v33 = vsel %vm1273_vm3, %v1272_v28, %v497_v30 }
0x120d   : > { %v1269_v29 = vmul.f32 %v1268_v27, %v1246_v21 }
0x120f   : > { %v1270_v32 = vadd.f32 %v1269_v29, %v1267_v31 }
0x1211   : > { %v1276_v14 = vsel %vm1275_vm4, %v1274_v33, %v1270_v32 }
0x1212   : > { %1278 = vst.msk [vmem:[%s328_s7] sm:$0xff] %vm1277_vm5, %v1276_v14 }
0x1213 PF: > { %p12_p9 = scmp.ge.s32.totalorder %s1536_s22, 4   ;;  %s1867_s18 = smov %s1480_s19 }
0x1214   : > { %s1868_s19 = smov %s1545_s25  ;;  %s1869_s20 = smov %s1536_s22 }
0x1215   :  { %14 = sbr.rel (!%p12_p9) target bundleno = 2 (0x2), region = 111 }

</bundles_post_ra>
